<compile_context>
chip_gen: v6e
topology: v6e:2x2x1
jax: 0.10.0
libtpu: 0.0.40
codegen_flags: <defaults>
</compile_context>

<pallas_src>
import functools

import jax
import jax.numpy as jnp
from jax import lax
from jax.experimental import pallas as pl
from jax.experimental.pallas import tpu as pltpu


OUT_LANES = 128  # lane-dense packed output width (lane0=logp, 1=value, 2=ent)


# ----------------------------- Pallas kernel ------------------------------ #
def _actor_critic_kernel(
    x_ref,       # (T, Bt, 2E) bf16  concat([actor_emb, value_emb], -1), time-major
    len_ref,     # (Bt, 1)    i32   sequence lengths
    act_ref,     # (Bt, 1)    i32   chosen actions
    wi_ref,      # (2E, 8H)   bf16  block-diag fused input weights (gates i,f,g,o)
    b_ref,       # (1, 8H)    f32   fused gate bias
    wh_ref,      # (2H, 8H)   bf16  block-diag fused hidden weights
    whead_ref,   # (2H, A+1)  bf16  block-diag fused [actor head | value head]
    bhead_ref,   # (1, A+1)   f32   fused head bias
    out_ref,     # (Bt, 128)  f32   packed output (lane 0/1/2 = logp/value/ent)
    xw_sc,       # (T*Bt, 8H) f32   scratch: hoisted input projection
):
    T, Bt, _ = x_ref.shape
    HC = wh_ref.shape[0]            # 2H (concatenated hidden width)
    A = whead_ref.shape[1] - 1

    # --- Hoisted input projection for BOTH branches: one bf16 MXU matmul. ---
    x_flat = x_ref[...].reshape(T * Bt, x_ref.shape[2])          # (T*Bt, 2E) bf16
    xw_sc[...] = (
        jnp.dot(x_flat, wi_ref[...], preferred_element_type=jnp.float32)
        + b_ref[...]
    )                                                            # (T*Bt, 8H) f32

    wh = wh_ref[...]                                             # (2H, 8H) bf16
    lens = len_ref[...]                                          # (Bt, 1) i32

    # --- Fused recurrence: h = [h_actor | h_value], c likewise (f32). ---
    def step(t, carry):
        h, c = carry                                             # (Bt, 2H) f32
        row = pl.multiple_of(t * Bt, Bt)
        g_in = xw_sc[pl.ds(row, Bt), :]                          # (Bt, 8H) f32
        gates = g_in + jnp.dot(h.astype(jnp.bfloat16), wh,
                               preferred_element_type=jnp.float32)
        i_g = jax.nn.sigmoid(gates[:, 0 * HC:1 * HC])
        f_g = jax.nn.sigmoid(gates[:, 1 * HC:2 * HC])
        g_g = jnp.tanh(gates[:, 2 * HC:3 * HC])
        o_g = jax.nn.sigmoid(gates[:, 3 * HC:4 * HC])
        c_new = f_g * c + i_g * g_g
        h_new = o_g * jnp.tanh(c_new)
        live = t < lens                                          # (Bt, 1) bool
        h = jnp.where(live, h_new, h)                            # broadcast select
        c = jnp.where(live, c_new, c)
        return h, c

    h0 = jnp.zeros((Bt, HC), jnp.float32)
    c0 = jnp.zeros((Bt, HC), jnp.float32)
    h_fin, _ = lax.fori_loop(0, T, step, (h0, c0), unroll=True)

    # --- Fused actor + value heads: one bf16 matmul, f32 acc. ---
    head = (
        jnp.dot(h_fin.astype(jnp.bfloat16), whead_ref[...],
                preferred_element_type=jnp.float32)
        + bhead_ref[...]
    )                                                            # (Bt, A+1) f32
    logits = head[:, :A]                                         # (Bt, A)
    value = head[:, A:A + 1]                                     # (Bt, 1)

    # --- Softmax -> log_prob(actions) & entropy (all f32, exact divide). ---
    m = jnp.max(logits, axis=-1, keepdims=True)
    shifted = logits - m
    exps = jnp.exp(shifted)
    denom = jnp.sum(exps, axis=-1, keepdims=True)
    log_probs = shifted - jnp.log(denom)                         # log_softmax
    probs = exps / denom                                         # exact (A lanes)

    acts = act_ref[...]                                          # (Bt, 1) i32
    col = lax.broadcasted_iota(jnp.int32, (Bt, A), 1)
    onehot = (col == acts).astype(jnp.float32)
    logp = jnp.sum(onehot * log_probs, axis=-1, keepdims=True)   # (Bt, 1)
    ent = -jnp.sum(probs * log_probs, axis=-1, keepdims=True)    # (Bt, 1)

    # --- Lane-dense packed output store. ---
    lane = lax.broadcasted_iota(jnp.int32, (Bt, OUT_LANES), 1)
    out_ref[...] = jnp.where(
        lane == 0, logp,
        jnp.where(lane == 1, value,
                  jnp.where(lane == 2, ent, 0.0)))


# ----------------------- static parameter repacking ------------------------ #
def _pack_params(params):
    """Block-diagonal fused weights (bf16) + fused biases (f32).

    Fine while 2H <= 128: the zero blocks sit in otherwise-idle MXU K-depth.
    # TODO(synk): if H grows to >=128, split back into per-branch matmuls (the
    # zero blocks become real MXU throughput loss).
    """
    E = params["wi_a"].shape[0]
    H = params["wh_a"].shape[0]
    A = params["wa"].shape[1]

    def gate(w, k):
        return w[:, k * H:(k + 1) * H]

    zE = jnp.zeros((E, H), jnp.float32)
    zH = jnp.zeros((H, H), jnp.float32)

    wi_blocks, wh_blocks, b_blocks = [], [], []
    for k in range(4):  # gate order i, f, g, o; each block = [actor | value]
        wi_blocks.append(jnp.block([[gate(params["wi_a"], k), zE],
                                    [zE, gate(params["wi_v"], k)]]))
        wh_blocks.append(jnp.block([[gate(params["wh_a"], k), zH],
                                    [zH, gate(params["wh_v"], k)]]))
        b_blocks.append(jnp.concatenate(
            [gate(params["b_a"], k), gate(params["b_v"], k)], axis=1))
    wi_cat = jnp.concatenate(wi_blocks, axis=1).astype(jnp.bfloat16)  # (2E, 8H)
    wh_cat = jnp.concatenate(wh_blocks, axis=1).astype(jnp.bfloat16)  # (2H, 8H)
    b_cat = jnp.concatenate(b_blocks, axis=1)                         # (1, 8H) f32

    w_head = jnp.block(
        [[params["wa"], jnp.zeros((H, 1), jnp.float32)],
         [jnp.zeros((H, A), jnp.float32), params["wv"]]]
    ).astype(jnp.bfloat16)                                            # (2H, A+1)
    b_head = jnp.concatenate([params["ba"], params["bv"]], axis=1)    # (1, A+1) f32
    return wi_cat, wh_cat, b_cat, w_head, b_head


def _pick_b_tile(b_pad):
    """Generation-aware batch tile.

    Cap at 64 rows so the f32 gate math of the unrolled recurrence stays in
    vregs.  On v7x (2 TensorCores/chip) prefer >=2 grid steps so the parallel
    batch axis shards across cores; on 1-TC chips keep the grid as short as
    possible (each extra step is ~0.35us of serial overhead).
    """
    cap = 64
    divisors = [d for d in range(8, min(cap, b_pad) + 1, 8) if b_pad % d == 0]
    if not divisors:
        return b_pad
    is_v7 = False
    try:
        is_v7 = "v7" in jax.devices()[0].device_kind.lower()
    except Exception:
        pass
    if is_v7 and b_pad >= 16:
        two_step = [d for d in divisors if b_pad // d >= 2]
        if two_step:
            return max(two_step)
    return max(divisors)


# ------------------------------ JAX wrapper ------------------------------- #
@functools.partial(jax.jit, static_argnames=())
def actor_critic_evaluate(params, states, states_lengths, actions):
    """Mirrors ActorCritic.evaluate: returns (log_probs, values, entropies)."""
    B, T = states.shape
    E = params["emb_a"].shape[1]
    H = params["wh_a"].shape[0]
    A = params["wa"].shape[1]

    wi_cat, wh_cat, b_cat, w_head, b_head = _pack_params(params)

    # Pad the batch to a multiple of 8 so batch sub-tiles are sublane aligned.
    b_pad = ((B + 7) // 8) * 8
    pad = b_pad - B
    states_p = jnp.pad(states, ((0, pad), (0, 0)))
    lens_p = jnp.pad(states_lengths.astype(jnp.int32), (0, pad)).reshape(b_pad, 1)
    acts_p = jnp.pad(actions.astype(jnp.int32), (0, pad)).reshape(b_pad, 1)

    # Fused embedding gather (glue): one lookup over concat([emb_a, emb_v]),
    # built time-major and cast to bf16 (halves gather + DMA bytes).
    emb_cat = jnp.concatenate([params["emb_a"], params["emb_v"]], axis=1)  # (V, 2E)
    x_cat = jnp.transpose(emb_cat[states_p], (1, 0, 2)).astype(jnp.bfloat16)  # (T, b_pad, 2E)

    b_tile = _pick_b_tile(b_pad)
    grid = (b_pad // b_tile,)

    # Grid-invariant fused weights/biases: whole-array VMEM residency (single
    # copy, no double-buffering of constants).
    const_vmem = pl.BlockSpec(memory_space=pltpu.MemorySpace.VMEM)

    grid_spec = pltpu.PrefetchScalarGridSpec(
        num_scalar_prefetch=0,
        grid=grid,
        in_specs=[
            pl.BlockSpec((T, b_tile, 2 * E), lambda b: (0, b, 0)),   # x_cat
            pl.BlockSpec((b_tile, 1), lambda b: (b, 0)),             # lens
            pl.BlockSpec((b_tile, 1), lambda b: (b, 0)),             # actions
            const_vmem,                                              # wi_cat
            const_vmem,                                              # b_cat
            const_vmem,                                              # wh_cat
            const_vmem,                                              # w_head
            const_vmem,                                              # b_head
        ],
        out_specs=pl.BlockSpec((b_tile, OUT_LANES), lambda b: (b, 0)),
        scratch_shapes=[
            # TODO(synk): for long sequences chunk this hoisted projection over
            # T blocks (fixed-size scratch) or fold Wi into the per-step matmul
            # so it still fits v7x's 64 MiB VMEM; fine at these shapes.
            pltpu.VMEM((T * b_tile, 8 * H), jnp.float32),            # xw
        ],
    )

    out = pl.pallas_call(
        _actor_critic_kernel,
        out_shape=jax.ShapeDtypeStruct((b_pad, OUT_LANES), jnp.float32),
        grid_spec=grid_spec,
        compiler_params=pltpu.CompilerParams(
            dimension_semantics=("parallel",)),
    )(x_cat, lens_p, acts_p, wi_cat, b_cat, wh_cat, w_head, b_head)

    # torch.squeeze(state_values) -> (B,)
    return out[:B, 0], out[:B, 1], out[:B, 2]


# ---------------------------- pure-JAX reference --------------------------- #
def _reference_evaluate(params, states, states_lengths, actions,
                        matmul_dtype=jnp.float32):
    """Same math as the module; matmul_dtype=bfloat16 mimics the kernel's
    mixed precision (bf16 matmul inputs, f32 accumulation / nonlinearities)."""
    B, T = states.shape
    H = params["wh_a"].shape[0]

    def mm(a, b):
        return jnp.dot(a.astype(matmul_dtype), b.astype(matmul_dtype),
                       preferred_element_type=jnp.float32)

    def lstm(x, wi, wh, b, lens):
        h = jnp.zeros((B, H), jnp.float32)
        c = jnp.zeros((B, H), jnp.float32)
        for t in range(T):
            gates = mm(x[t], wi) + mm(h, wh) + b
            i_g = jax.nn.sigmoid(gates[:, 0 * H:1 * H])
            f_g = jax.nn.sigmoid(gates[:, 1 * H:2 * H])
            g_g = jnp.tanh(gates[:, 2 * H:3 * H])
            o_g = jax.nn.sigmoid(gates[:, 3 * H:4 * H])
            c_new = f_g * c + i_g * g_g
            h_new = o_g * jnp.tanh(c_new)
            m = (t < lens).astype(jnp.float32)[:, None]
            h = m * h_new + (1 - m) * h
            c = m * c_new + (1 - m) * c
        return h

    lens = states_lengths.astype(jnp.float32)
    xa = jnp.transpose(params["emb_a"][states], (1, 0, 2))
    xv = jnp.transpose(params["emb_v"][states], (1, 0, 2))
    h_a = lstm(xa, params["wi_a"], params["wh_a"], params["b_a"], lens)
    logits = mm(h_a, params["wa"]) + params["ba"]
    log_probs = jax.nn.log_softmax(logits, axis=-1)
    probs = jnp.exp(log_probs)
    logp = jnp.take_along_axis(log_probs, actions[:, None], axis=-1)[:, 0]
    ent = -jnp.sum(probs * log_probs, axis=-1)
    h_v = lstm(xv, params["wi_v"], params["wh_v"], params["b_v"], lens)
    val = (mm(h_v, params["wv"]) + params["bv"])[:, 0]
    return logp, val, ent


# --------------------------------- main ------------------------------------ #
if __name__ == "__main__":
    # Small, module-consistent shapes.
    B, T = 8, 8          # batch of padded state sequences, max seq len
    V = 16               # vocab size of state tokens
    E, H = 32, 32        # embedding / hidden size
    A = 6                # action_size

    key = jax.random.PRNGKey(0)
    ks = jax.random.split(key, 12)

    def init(k, shape, scale=0.1):
        return (scale * jax.random.normal(k, shape)).astype(jnp.float32)

    params = {
        "emb_a": init(ks[0], (V, E)),
        "emb_v": init(ks[1], (V, E)),
        "wi_a": init(ks[2], (E, 4 * H)),
        "wh_a": init(ks[3], (H, 4 * H)),
        "b_a":  init(ks[4], (1, 4 * H)),
        "wa":   init(ks[5], (H, A)),
        "ba":   init(ks[6], (1, A)),
        "wi_v": init(ks[7], (E, 4 * H)),
        "wh_v": init(ks[8], (H, 4 * H)),
        "b_v":  init(ks[9], (1, 4 * H)),
        "wv":   init(ks[10], (H, 1)),
        "bv":   init(ks[11], (1, 1)),
    }

    dk1, dk2, dk3 = jax.random.split(jax.random.PRNGKey(1), 3)
    states = jax.random.randint(dk1, (B, T), 0, V, dtype=jnp.int32)
    states_lengths = jax.random.randint(dk2, (B,), 2, T + 1, dtype=jnp.int32)
    actions = jax.random.randint(dk3, (B,), 0, A, dtype=jnp.int32)

    logp, val, ent = actor_critic_evaluate(params, states, states_lengths, actions)
    jax.block_until_ready((logp, val, ent))

    # Tight check vs. a reference using the SAME mixed precision as the kernel.
    r_logp, r_val, r_ent = _reference_evaluate(
        params, states, states_lengths, actions, matmul_dtype=jnp.bfloat16)
    assert jnp.allclose(logp, r_logp, atol=5e-4, rtol=5e-4)
    assert jnp.allclose(val, r_val, atol=5e-4, rtol=5e-4)
    assert jnp.allclose(ent, r_ent, atol=5e-4, rtol=5e-4)

    # Loose sanity check vs. the full-f32 reference (bf16 matmul rounding only).
    f_logp, f_val, f_ent = _reference_evaluate(
        params, states, states_lengths, actions, matmul_dtype=jnp.float32)
    assert jnp.allclose(logp, f_logp, atol=3e-2, rtol=3e-2)
    assert jnp.allclose(val, f_val, atol=3e-2, rtol=3e-2)
    assert jnp.allclose(ent, f_ent, atol=3e-2, rtol=3e-2)

    print("KERNEL_OK")
</pallas_src>

<mosaic_0001>
module attributes {stable_mosaic.version = 11 : i64} {
  func.func @_actor_critic_kernel(%arg0: i32, %arg1: memref<8x8x64xbf16, #tpu.memory_space<vmem>>, %arg2: memref<8x1xi32, #tpu.memory_space<vmem>>, %arg3: memref<8x1xi32, #tpu.memory_space<vmem>>, %arg4: memref<64x256xbf16, #tpu.memory_space<vmem>>, %arg5: memref<1x256xf32, #tpu.memory_space<vmem>>, %arg6: memref<64x256xbf16, #tpu.memory_space<vmem>>, %arg7: memref<64x7xbf16, #tpu.memory_space<vmem>>, %arg8: memref<1x7xf32, #tpu.memory_space<vmem>>, %arg9: memref<8x128xf32, #tpu.memory_space<vmem>>, %arg10: memref<64x256xf32, #tpu.memory_space<vmem>>) attributes {dimension_semantics = [#tpu.dimension_semantics<parallel>], iteration_bounds = array<i64: 1>, scalar_prefetch = 0 : i64, scratch_operands = 1 : i64, tpu.core_type = #tpu.core_type<tc>, window_params = [{transform_indices = @transform_0, window_bounds = array<i64: 8, 8, 64>}, {transform_indices = @transform_1, window_bounds = array<i64: 8, 1>}, {transform_indices = @transform_2, window_bounds = array<i64: 8, 1>}, {pipeline_mode = #tpu.pipeline_mode<synchronous>, transform_indices = @transform_3, window_bounds = array<i64: 64, 256>}, {pipeline_mode = #tpu.pipeline_mode<synchronous>, transform_indices = @transform_4, window_bounds = array<i64: 1, 256>}, {pipeline_mode = #tpu.pipeline_mode<synchronous>, transform_indices = @transform_5, window_bounds = array<i64: 64, 256>}, {pipeline_mode = #tpu.pipeline_mode<synchronous>, transform_indices = @transform_6, window_bounds = array<i64: 64, 7>}, {pipeline_mode = #tpu.pipeline_mode<synchronous>, transform_indices = @transform_7, window_bounds = array<i64: 1, 7>}, {transform_indices = @transform_8, window_bounds = array<i64: 8, 128>}]} {
    %c0 = arith.constant 0 : index
    %c0_0 = arith.constant 0 : index
    %c0_1 = arith.constant 0 : index
    %0 = vector.load %arg1[%c0, %c0_0, %c0_1] : memref<8x8x64xbf16, #tpu.memory_space<vmem>>, vector<8x8x64xbf16>
    %1 = vector.shape_cast %0 : vector<8x8x64xbf16> to vector<64x64xbf16>
    %c0_2 = arith.constant 0 : index
    %c0_3 = arith.constant 0 : index
    %2 = vector.load %arg4[%c0_2, %c0_3] : memref<64x256xbf16, #tpu.memory_space<vmem>>, vector<64x256xbf16>
    %cst = arith.constant dense<0.000000e+00> : vector<64x256xf32>
    %3 = tpu.matmul %1, %2, %cst {dimension_numbers = #tpu.dot_dimension_numbers<[1], [0], [0], [1], [0, 0, 1, 1], [], []>} : vector<64x64xbf16>, vector<64x256xbf16>, vector<64x256xf32> -> vector<64x256xf32>
    %c0_4 = arith.constant 0 : index
    %c0_5 = arith.constant 0 : index
    %4 = vector.load %arg5[%c0_4, %c0_5] : memref<1x256xf32, #tpu.memory_space<vmem>>, vector<1x256xf32>
    %5 = vector.broadcast %4 : vector<1x256xf32> to vector<64x256xf32>
    %6 = arith.addf %3, %5 : vector<64x256xf32>
    %c0_6 = arith.constant 0 : index
    %c0_7 = arith.constant 0 : index
    %7 = vector.load %arg10[%c0_6, %c0_7] : memref<64x256xf32, #tpu.memory_space<vmem>>, vector<64x256xf32>
    tpu.vector_store %arg10[%c0_6, %c0_7], %6 {strides = array<i32>} : memref<64x256xf32, #tpu.memory_space<vmem>>, vector<64x256xf32>,
    %c0_8 = arith.constant 0 : index
    %c0_9 = arith.constant 0 : index
    %8 = vector.load %arg6[%c0_8, %c0_9] : memref<64x256xbf16, #tpu.memory_space<vmem>>, vector<64x256xbf16>
    %c0_10 = arith.constant 0 : index
    %c0_11 = arith.constant 0 : index
    %9 = vector.load %arg2[%c0_10, %c0_11] : memref<8x1xi32, #tpu.memory_space<vmem>>, vector<8x1xi32>
    %cst_12 = arith.constant 0.000000e+00 : f32
    %10 = vector.broadcast %cst_12 : f32 to vector<8x64xf32>
    %cst_13 = arith.constant 0.000000e+00 : f32
    %11 = vector.broadcast %cst_13 : f32 to vector<8x64xf32>
    %c0_i32 = arith.constant 0 : i32
    %c8_i32 = arith.constant 8 : i32
    %12 = arith.muli %c0_i32, %c8_i32 : i32
    %13 = tpu.assume_multiple %12, 8 : i32
    %14 = arith.index_cast %13 : i32 to index
    %c0_14 = arith.constant 0 : index
    %15 = vector.load %arg10[%14, %c0_14] : memref<64x256xf32, #tpu.memory_space<vmem>>, vector<8x256xf32>
    %16 = arith.truncf %10 : vector<8x64xf32> to vector<8x64xbf16>
    %cst_15 = arith.constant dense<0.000000e+00> : vector<8x256xf32>
    %17 = tpu.matmul %16, %8, %cst_15 {dimension_numbers = #tpu.dot_dimension_numbers<[1], [0], [0], [1], [0, 0, 1, 1], [], []>} : vector<8x64xbf16>, vector<64x256xbf16>, vector<8x256xf32> -> vector<8x256xf32>
    %18 = arith.addf %15, %17 : vector<8x256xf32>
    %19 = vector.extract_strided_slice %18 {offsets = [0, 0], sizes = [8, 64], strides = [1, 1]} : vector<8x256xf32> to vector<8x64xf32>
    %20 = arith.negf %19 : vector<8x64xf32>
    %21 = math.exp %20 : vector<8x64xf32>
    %cst_16 = arith.constant 1.000000e+00 : f32
    %22 = vector.broadcast %cst_16 : f32 to vector<8x64xf32>
    %23 = arith.addf %22, %21 : vector<8x64xf32>
    %24 = arith.divf %22, %23 : vector<8x64xf32>
    %25 = vector.extract_strided_slice %18 {offsets = [0, 64], sizes = [8, 64], strides = [1, 1]} : vector<8x256xf32> to vector<8x64xf32>
    %26 = arith.negf %25 : vector<8x64xf32>
    %27 = math.exp %26 : vector<8x64xf32>
    %cst_17 = arith.constant 1.000000e+00 : f32
    %28 = vector.broadcast %cst_17 : f32 to vector<8x64xf32>
    %29 = arith.addf %28, %27 : vector<8x64xf32>
    %30 = arith.divf %28, %29 : vector<8x64xf32>
    %31 = vector.extract_strided_slice %18 {offsets = [0, 128], sizes = [8, 64], strides = [1, 1]} : vector<8x256xf32> to vector<8x64xf32>
    %32 = math.tanh %31 : vector<8x64xf32>
    %33 = vector.extract_strided_slice %18 {offsets = [0, 192], sizes = [8, 64], strides = [1, 1]} : vector<8x256xf32> to vector<8x64xf32>
    %34 = arith.negf %33 : vector<8x64xf32>
    %35 = math.exp %34 : vector<8x64xf32>
    %cst_18 = arith.constant 1.000000e+00 : f32
    %36 = vector.broadcast %cst_18 : f32 to vector<8x64xf32>
    %37 = arith.addf %36, %35 : vector<8x64xf32>
    %38 = arith.divf %36, %37 : vector<8x64xf32>
    %39 = arith.mulf %30, %11 : vector<8x64xf32>
    %40 = arith.mulf %24, %32 : vector<8x64xf32>
    %41 = arith.addf %39, %40 : vector<8x64xf32>
    %42 = math.tanh %41 : vector<8x64xf32>
    %43 = arith.mulf %38, %42 : vector<8x64xf32>
    %44 = vector.broadcast %c0_i32 : i32 to vector<8x1xi32>
    %45 = arith.cmpi slt, %44, %9 : vector<8x1xi32>
    %46 = vector.shape_cast %45 : vector<8x1xi1> to vector<8x1xi1>
    %47 = vector.broadcast %46 : vector<8x1xi1> to vector<8x64xi1>
    %48 = arith.select %47, %43, %10 : vector<8x64xi1>, vector<8x64xf32>
    %49 = vector.shape_cast %45 : vector<8x1xi1> to vector<8x1xi1>
    %50 = vector.broadcast %49 : vector<8x1xi1> to vector<8x64xi1>
    %51 = arith.select %50, %41, %11 : vector<8x64xi1>, vector<8x64xf32>
    %c1_i32 = arith.constant 1 : i32
    %c8_i32_19 = arith.constant 8 : i32
    %52 = arith.muli %c1_i32, %c8_i32_19 : i32
    %53 = tpu.assume_multiple %52, 8 : i32
    %54 = arith.index_cast %53 : i32 to index
    %c0_20 = arith.constant 0 : index
    %55 = vector.load %arg10[%54, %c0_20] : memref<64x256xf32, #tpu.memory_space<vmem>>, vector<8x256xf32>
    %56 = arith.truncf %48 : vector<8x64xf32> to vector<8x64xbf16>
    %cst_21 = arith.constant dense<0.000000e+00> : vector<8x256xf32>
    %57 = tpu.matmul %56, %8, %cst_21 {dimension_numbers = #tpu.dot_dimension_numbers<[1], [0], [0], [1], [0, 0, 1, 1], [], []>} : vector<8x64xbf16>, vector<64x256xbf16>, vector<8x256xf32> -> vector<8x256xf32>
    %58 = arith.addf %55, %57 : vector<8x256xf32>
    %59 = vector.extract_strided_slice %58 {offsets = [0, 0], sizes = [8, 64], strides = [1, 1]} : vector<8x256xf32> to vector<8x64xf32>
    %60 = arith.negf %59 : vector<8x64xf32>
    %61 = math.exp %60 : vector<8x64xf32>
    %cst_22 = arith.constant 1.000000e+00 : f32
    %62 = vector.broadcast %cst_22 : f32 to vector<8x64xf32>
    %63 = arith.addf %62, %61 : vector<8x64xf32>
    %64 = arith.divf %62, %63 : vector<8x64xf32>
    %65 = vector.extract_strided_slice %58 {offsets = [0, 64], sizes = [8, 64], strides = [1, 1]} : vector<8x256xf32> to vector<8x64xf32>
    %66 = arith.negf %65 : vector<8x64xf32>
    %67 = math.exp %66 : vector<8x64xf32>
    %cst_23 = arith.constant 1.000000e+00 : f32
    %68 = vector.broadcast %cst_23 : f32 to vector<8x64xf32>
    %69 = arith.addf %68, %67 : vector<8x64xf32>
    %70 = arith.divf %68, %69 : vector<8x64xf32>
    %71 = vector.extract_strided_slice %58 {offsets = [0, 128], sizes = [8, 64], strides = [1, 1]} : vector<8x256xf32> to vector<8x64xf32>
    %72 = math.tanh %71 : vector<8x64xf32>
    %73 = vector.extract_strided_slice %58 {offsets = [0, 192], sizes = [8, 64], strides = [1, 1]} : vector<8x256xf32> to vector<8x64xf32>
    %74 = arith.negf %73 : vector<8x64xf32>
    %75 = math.exp %74 : vector<8x64xf32>
    %cst_24 = arith.constant 1.000000e+00 : f32
    %76 = vector.broadcast %cst_24 : f32 to vector<8x64xf32>
    %77 = arith.addf %76, %75 : vector<8x64xf32>
    %78 = arith.divf %76, %77 : vector<8x64xf32>
    %79 = arith.mulf %70, %51 : vector<8x64xf32>
    %80 = arith.mulf %64, %72 : vector<8x64xf32>
    %81 = arith.addf %79, %80 : vector<8x64xf32>
    %82 = math.tanh %81 : vector<8x64xf32>
    %83 = arith.mulf %78, %82 : vector<8x64xf32>
    %84 = vector.broadcast %c1_i32 : i32 to vector<8x1xi32>
    %85 = arith.cmpi slt, %84, %9 : vector<8x1xi32>
    %86 = vector.shape_cast %85 : vector<8x1xi1> to vector<8x1xi1>
    %87 = vector.broadcast %86 : vector<8x1xi1> to vector<8x64xi1>
    %88 = arith.select %87, %83, %48 : vector<8x64xi1>, vector<8x64xf32>
    %89 = vector.shape_cast %85 : vector<8x1xi1> to vector<8x1xi1>
    %90 = vector.broadcast %89 : vector<8x1xi1> to vector<8x64xi1>
    %91 = arith.select %90, %81, %51 : vector<8x64xi1>, vector<8x64xf32>
    %c2_i32 = arith.constant 2 : i32
    %c8_i32_25 = arith.constant 8 : i32
    %92 = arith.muli %c2_i32, %c8_i32_25 : i32
    %93 = tpu.assume_multiple %92, 8 : i32
    %94 = arith.index_cast %93 : i32 to index
    %c0_26 = arith.constant 0 : index
    %95 = vector.load %arg10[%94, %c0_26] : memref<64x256xf32, #tpu.memory_space<vmem>>, vector<8x256xf32>
    %96 = arith.truncf %88 : vector<8x64xf32> to vector<8x64xbf16>
    %cst_27 = arith.constant dense<0.000000e+00> : vector<8x256xf32>
    %97 = tpu.matmul %96, %8, %cst_27 {dimension_numbers = #tpu.dot_dimension_numbers<[1], [0], [0], [1], [0, 0, 1, 1], [], []>} : vector<8x64xbf16>, vector<64x256xbf16>, vector<8x256xf32> -> vector<8x256xf32>
    %98 = arith.addf %95, %97 : vector<8x256xf32>
    %99 = vector.extract_strided_slice %98 {offsets = [0, 0], sizes = [8, 64], strides = [1, 1]} : vector<8x256xf32> to vector<8x64xf32>
    %100 = arith.negf %99 : vector<8x64xf32>
    %101 = math.exp %100 : vector<8x64xf32>
    %cst_28 = arith.constant 1.000000e+00 : f32
    %102 = vector.broadcast %cst_28 : f32 to vector<8x64xf32>
    %103 = arith.addf %102, %101 : vector<8x64xf32>
    %104 = arith.divf %102, %103 : vector<8x64xf32>
    %105 = vector.extract_strided_slice %98 {offsets = [0, 64], sizes = [8, 64], strides = [1, 1]} : vector<8x256xf32> to vector<8x64xf32>
    %106 = arith.negf %105 : vector<8x64xf32>
    %107 = math.exp %106 : vector<8x64xf32>
    %cst_29 = arith.constant 1.000000e+00 : f32
    %108 = vector.broadcast %cst_29 : f32 to vector<8x64xf32>
    %109 = arith.addf %108, %107 : vector<8x64xf32>
    %110 = arith.divf %108, %109 : vector<8x64xf32>
    %111 = vector.extract_strided_slice %98 {offsets = [0, 128], sizes = [8, 64], strides = [1, 1]} : vector<8x256xf32> to vector<8x64xf32>
    %112 = math.tanh %111 : vector<8x64xf32>
    %113 = vector.extract_strided_slice %98 {offsets = [0, 192], sizes = [8, 64], strides = [1, 1]} : vector<8x256xf32> to vector<8x64xf32>
    %114 = arith.negf %113 : vector<8x64xf32>
    %115 = math.exp %114 : vector<8x64xf32>
    %cst_30 = arith.constant 1.000000e+00 : f32
    %116 = vector.broadcast %cst_30 : f32 to vector<8x64xf32>
    %117 = arith.addf %116, %115 : vector<8x64xf32>
    %118 = arith.divf %116, %117 : vector<8x64xf32>
    %119 = arith.mulf %110, %91 : vector<8x64xf32>
    %120 = arith.mulf %104, %112 : vector<8x64xf32>
    %121 = arith.addf %119, %120 : vector<8x64xf32>
    %122 = math.tanh %121 : vector<8x64xf32>
    %123 = arith.mulf %118, %122 : vector<8x64xf32>
    %124 = vector.broadcast %c2_i32 : i32 to vector<8x1xi32>
    %125 = arith.cmpi slt, %124, %9 : vector<8x1xi32>
    %126 = vector.shape_cast %125 : vector<8x1xi1> to vector<8x1xi1>
    %127 = vector.broadcast %126 : vector<8x1xi1> to vector<8x64xi1>
    %128 = arith.select %127, %123, %88 : vector<8x64xi1>, vector<8x64xf32>
    %129 = vector.shape_cast %125 : vector<8x1xi1> to vector<8x1xi1>
    %130 = vector.broadcast %129 : vector<8x1xi1> to vector<8x64xi1>
    %131 = arith.select %130, %121, %91 : vector<8x64xi1>, vector<8x64xf32>
    %c3_i32 = arith.constant 3 : i32
    %c8_i32_31 = arith.constant 8 : i32
    %132 = arith.muli %c3_i32, %c8_i32_31 : i32
    %133 = tpu.assume_multiple %132, 8 : i32
    %134 = arith.index_cast %133 : i32 to index
    %c0_32 = arith.constant 0 : index
    %135 = vector.load %arg10[%134, %c0_32] : memref<64x256xf32, #tpu.memory_space<vmem>>, vector<8x256xf32>
    %136 = arith.truncf %128 : vector<8x64xf32> to vector<8x64xbf16>
    %cst_33 = arith.constant dense<0.000000e+00> : vector<8x256xf32>
    %137 = tpu.matmul %136, %8, %cst_33 {dimension_numbers = #tpu.dot_dimension_numbers<[1], [0], [0], [1], [0, 0, 1, 1], [], []>} : vector<8x64xbf16>, vector<64x256xbf16>, vector<8x256xf32> -> vector<8x256xf32>
    %138 = arith.addf %135, %137 : vector<8x256xf32>
    %139 = vector.extract_strided_slice %138 {offsets = [0, 0], sizes = [8, 64], strides = [1, 1]} : vector<8x256xf32> to vector<8x64xf32>
    %140 = arith.negf %139 : vector<8x64xf32>
    %141 = math.exp %140 : vector<8x64xf32>
    %cst_34 = arith.constant 1.000000e+00 : f32
    %142 = vector.broadcast %cst_34 : f32 to vector<8x64xf32>
    %143 = arith.addf %142, %141 : vector<8x64xf32>
    %144 = arith.divf %142, %143 : vector<8x64xf32>
    %145 = vector.extract_strided_slice %138 {offsets = [0, 64], sizes = [8, 64], strides = [1, 1]} : vector<8x256xf32> to vector<8x64xf32>
    %146 = arith.negf %145 : vector<8x64xf32>
    %147 = math.exp %146 : vector<8x64xf32>
    %cst_35 = arith.constant 1.000000e+00 : f32
    %148 = vector.broadcast %cst_35 : f32 to vector<8x64xf32>
    %149 = arith.addf %148, %147 : vector<8x64xf32>
    %150 = arith.divf %148, %149 : vector<8x64xf32>
    %151 = vector.extract_strided_slice %138 {offsets = [0, 128], sizes = [8, 64], strides = [1, 1]} : vector<8x256xf32> to vector<8x64xf32>
    %152 = math.tanh %151 : vector<8x64xf32>
    %153 = vector.extract_strided_slice %138 {offsets = [0, 192], sizes = [8, 64], strides = [1, 1]} : vector<8x256xf32> to vector<8x64xf32>
    %154 = arith.negf %153 : vector<8x64xf32>
    %155 = math.exp %154 : vector<8x64xf32>
    %cst_36 = arith.constant 1.000000e+00 : f32
    %156 = vector.broadcast %cst_36 : f32 to vector<8x64xf32>
    %157 = arith.addf %156, %155 : vector<8x64xf32>
    %158 = arith.divf %156, %157 : vector<8x64xf32>
    %159 = arith.mulf %150, %131 : vector<8x64xf32>
    %160 = arith.mulf %144, %152 : vector<8x64xf32>
    %161 = arith.addf %159, %160 : vector<8x64xf32>
    %162 = math.tanh %161 : vector<8x64xf32>
    %163 = arith.mulf %158, %162 : vector<8x64xf32>
    %164 = vector.broadcast %c3_i32 : i32 to vector<8x1xi32>
    %165 = arith.cmpi slt, %164, %9 : vector<8x1xi32>
    %166 = vector.shape_cast %165 : vector<8x1xi1> to vector<8x1xi1>
    %167 = vector.broadcast %166 : vector<8x1xi1> to vector<8x64xi1>
    %168 = arith.select %167, %163, %128 : vector<8x64xi1>, vector<8x64xf32>
    %169 = vector.shape_cast %165 : vector<8x1xi1> to vector<8x1xi1>
    %170 = vector.broadcast %169 : vector<8x1xi1> to vector<8x64xi1>
    %171 = arith.select %170, %161, %131 : vector<8x64xi1>, vector<8x64xf32>
    %c4_i32 = arith.constant 4 : i32
    %c8_i32_37 = arith.constant 8 : i32
    %172 = arith.muli %c4_i32, %c8_i32_37 : i32
    %173 = tpu.assume_multiple %172, 8 : i32
    %174 = arith.index_cast %173 : i32 to index
    %c0_38 = arith.constant 0 : index
    %175 = vector.load %arg10[%174, %c0_38] : memref<64x256xf32, #tpu.memory_space<vmem>>, vector<8x256xf32>
    %176 = arith.truncf %168 : vector<8x64xf32> to vector<8x64xbf16>
    %cst_39 = arith.constant dense<0.000000e+00> : vector<8x256xf32>
    %177 = tpu.matmul %176, %8, %cst_39 {dimension_numbers = #tpu.dot_dimension_numbers<[1], [0], [0], [1], [0, 0, 1, 1], [], []>} : vector<8x64xbf16>, vector<64x256xbf16>, vector<8x256xf32> -> vector<8x256xf32>
    %178 = arith.addf %175, %177 : vector<8x256xf32>
    %179 = vector.extract_strided_slice %178 {offsets = [0, 0], sizes = [8, 64], strides = [1, 1]} : vector<8x256xf32> to vector<8x64xf32>
    %180 = arith.negf %179 : vector<8x64xf32>
    %181 = math.exp %180 : vector<8x64xf32>
    %cst_40 = arith.constant 1.000000e+00 : f32
    %182 = vector.broadcast %cst_40 : f32 to vector<8x64xf32>
    %183 = arith.addf %182, %181 : vector<8x64xf32>
    %184 = arith.divf %182, %183 : vector<8x64xf32>
    %185 = vector.extract_strided_slice %178 {offsets = [0, 64], sizes = [8, 64], strides = [1, 1]} : vector<8x256xf32> to vector<8x64xf32>
    %186 = arith.negf %185 : vector<8x64xf32>
    %187 = math.exp %186 : vector<8x64xf32>
    %cst_41 = arith.constant 1.000000e+00 : f32
    %188 = vector.broadcast %cst_41 : f32 to vector<8x64xf32>
    %189 = arith.addf %188, %187 : vector<8x64xf32>
    %190 = arith.divf %188, %189 : vector<8x64xf32>
    %191 = vector.extract_strided_slice %178 {offsets = [0, 128], sizes = [8, 64], strides = [1, 1]} : vector<8x256xf32> to vector<8x64xf32>
    %192 = math.tanh %191 : vector<8x64xf32>
    %193 = vector.extract_strided_slice %178 {offsets = [0, 192], sizes = [8, 64], strides = [1, 1]} : vector<8x256xf32> to vector<8x64xf32>
    %194 = arith.negf %193 : vector<8x64xf32>
    %195 = math.exp %194 : vector<8x64xf32>
    %cst_42 = arith.constant 1.000000e+00 : f32
    %196 = vector.broadcast %cst_42 : f32 to vector<8x64xf32>
    %197 = arith.addf %196, %195 : vector<8x64xf32>
    %198 = arith.divf %196, %197 : vector<8x64xf32>
    %199 = arith.mulf %190, %171 : vector<8x64xf32>
    %200 = arith.mulf %184, %192 : vector<8x64xf32>
    %201 = arith.addf %199, %200 : vector<8x64xf32>
    %202 = math.tanh %201 : vector<8x64xf32>
    %203 = arith.mulf %198, %202 : vector<8x64xf32>
    %204 = vector.broadcast %c4_i32 : i32 to vector<8x1xi32>
    %205 = arith.cmpi slt, %204, %9 : vector<8x1xi32>
    %206 = vector.shape_cast %205 : vector<8x1xi1> to vector<8x1xi1>
    %207 = vector.broadcast %206 : vector<8x1xi1> to vector<8x64xi1>
    %208 = arith.select %207, %203, %168 : vector<8x64xi1>, vector<8x64xf32>
    %209 = vector.shape_cast %205 : vector<8x1xi1> to vector<8x1xi1>
    %210 = vector.broadcast %209 : vector<8x1xi1> to vector<8x64xi1>
    %211 = arith.select %210, %201, %171 : vector<8x64xi1>, vector<8x64xf32>
    %c5_i32 = arith.constant 5 : i32
    %c8_i32_43 = arith.constant 8 : i32
    %212 = arith.muli %c5_i32, %c8_i32_43 : i32
    %213 = tpu.assume_multiple %212, 8 : i32
    %214 = arith.index_cast %213 : i32 to index
    %c0_44 = arith.constant 0 : index
    %215 = vector.load %arg10[%214, %c0_44] : memref<64x256xf32, #tpu.memory_space<vmem>>, vector<8x256xf32>
    %216 = arith.truncf %208 : vector<8x64xf32> to vector<8x64xbf16>
    %cst_45 = arith.constant dense<0.000000e+00> : vector<8x256xf32>
    %217 = tpu.matmul %216, %8, %cst_45 {dimension_numbers = #tpu.dot_dimension_numbers<[1], [0], [0], [1], [0, 0, 1, 1], [], []>} : vector<8x64xbf16>, vector<64x256xbf16>, vector<8x256xf32> -> vector<8x256xf32>
    %218 = arith.addf %215, %217 : vector<8x256xf32>
    %219 = vector.extract_strided_slice %218 {offsets = [0, 0], sizes = [8, 64], strides = [1, 1]} : vector<8x256xf32> to vector<8x64xf32>
    %220 = arith.negf %219 : vector<8x64xf32>
    %221 = math.exp %220 : vector<8x64xf32>
    %cst_46 = arith.constant 1.000000e+00 : f32
    %222 = vector.broadcast %cst_46 : f32 to vector<8x64xf32>
    %223 = arith.addf %222, %221 : vector<8x64xf32>
    %224 = arith.divf %222, %223 : vector<8x64xf32>
    %225 = vector.extract_strided_slice %218 {offsets = [0, 64], sizes = [8, 64], strides = [1, 1]} : vector<8x256xf32> to vector<8x64xf32>
    %226 = arith.negf %225 : vector<8x64xf32>
    %227 = math.exp %226 : vector<8x64xf32>
    %cst_47 = arith.constant 1.000000e+00 : f32
    %228 = vector.broadcast %cst_47 : f32 to vector<8x64xf32>
    %229 = arith.addf %228, %227 : vector<8x64xf32>
    %230 = arith.divf %228, %229 : vector<8x64xf32>
    %231 = vector.extract_strided_slice %218 {offsets = [0, 128], sizes = [8, 64], strides = [1, 1]} : vector<8x256xf32> to vector<8x64xf32>
    %232 = math.tanh %231 : vector<8x64xf32>
    %233 = vector.extract_strided_slice %218 {offsets = [0, 192], sizes = [8, 64], strides = [1, 1]} : vector<8x256xf32> to vector<8x64xf32>
    %234 = arith.negf %233 : vector<8x64xf32>
    %235 = math.exp %234 : vector<8x64xf32>
    %cst_48 = arith.constant 1.000000e+00 : f32
    %236 = vector.broadcast %cst_48 : f32 to vector<8x64xf32>
    %237 = arith.addf %236, %235 : vector<8x64xf32>
    %238 = arith.divf %236, %237 : vector<8x64xf32>
    %239 = arith.mulf %230, %211 : vector<8x64xf32>
    %240 = arith.mulf %224, %232 : vector<8x64xf32>
    %241 = arith.addf %239, %240 : vector<8x64xf32>
    %242 = math.tanh %241 : vector<8x64xf32>
    %243 = arith.mulf %238, %242 : vector<8x64xf32>
    %244 = vector.broadcast %c5_i32 : i32 to vector<8x1xi32>
    %245 = arith.cmpi slt, %244, %9 : vector<8x1xi32>
    %246 = vector.shape_cast %245 : vector<8x1xi1> to vector<8x1xi1>
    %247 = vector.broadcast %246 : vector<8x1xi1> to vector<8x64xi1>
    %248 = arith.select %247, %243, %208 : vector<8x64xi1>, vector<8x64xf32>
    %249 = vector.shape_cast %245 : vector<8x1xi1> to vector<8x1xi1>
    %250 = vector.broadcast %249 : vector<8x1xi1> to vector<8x64xi1>
    %251 = arith.select %250, %241, %211 : vector<8x64xi1>, vector<8x64xf32>
    %c6_i32 = arith.constant 6 : i32
    %c8_i32_49 = arith.constant 8 : i32
    %252 = arith.muli %c6_i32, %c8_i32_49 : i32
    %253 = tpu.assume_multiple %252, 8 : i32
    %254 = arith.index_cast %253 : i32 to index
    %c0_50 = arith.constant 0 : index
    %255 = vector.load %arg10[%254, %c0_50] : memref<64x256xf32, #tpu.memory_space<vmem>>, vector<8x256xf32>
    %256 = arith.truncf %248 : vector<8x64xf32> to vector<8x64xbf16>
    %cst_51 = arith.constant dense<0.000000e+00> : vector<8x256xf32>
    %257 = tpu.matmul %256, %8, %cst_51 {dimension_numbers = #tpu.dot_dimension_numbers<[1], [0], [0], [1], [0, 0, 1, 1], [], []>} : vector<8x64xbf16>, vector<64x256xbf16>, vector<8x256xf32> -> vector<8x256xf32>
    %258 = arith.addf %255, %257 : vector<8x256xf32>
    %259 = vector.extract_strided_slice %258 {offsets = [0, 0], sizes = [8, 64], strides = [1, 1]} : vector<8x256xf32> to vector<8x64xf32>
    %260 = arith.negf %259 : vector<8x64xf32>
    %261 = math.exp %260 : vector<8x64xf32>
    %cst_52 = arith.constant 1.000000e+00 : f32
    %262 = vector.broadcast %cst_52 : f32 to vector<8x64xf32>
    %263 = arith.addf %262, %261 : vector<8x64xf32>
    %264 = arith.divf %262, %263 : vector<8x64xf32>
    %265 = vector.extract_strided_slice %258 {offsets = [0, 64], sizes = [8, 64], strides = [1, 1]} : vector<8x256xf32> to vector<8x64xf32>
    %266 = arith.negf %265 : vector<8x64xf32>
    %267 = math.exp %266 : vector<8x64xf32>
    %cst_53 = arith.constant 1.000000e+00 : f32
    %268 = vector.broadcast %cst_53 : f32 to vector<8x64xf32>
    %269 = arith.addf %268, %267 : vector<8x64xf32>
    %270 = arith.divf %268, %269 : vector<8x64xf32>
    %271 = vector.extract_strided_slice %258 {offsets = [0, 128], sizes = [8, 64], strides = [1, 1]} : vector<8x256xf32> to vector<8x64xf32>
    %272 = math.tanh %271 : vector<8x64xf32>
    %273 = vector.extract_strided_slice %258 {offsets = [0, 192], sizes = [8, 64], strides = [1, 1]} : vector<8x256xf32> to vector<8x64xf32>
    %274 = arith.negf %273 : vector<8x64xf32>
    %275 = math.exp %274 : vector<8x64xf32>
    %cst_54 = arith.constant 1.000000e+00 : f32
    %276 = vector.broadcast %cst_54 : f32 to vector<8x64xf32>
    %277 = arith.addf %276, %275 : vector<8x64xf32>
    %278 = arith.divf %276, %277 : vector<8x64xf32>
    %279 = arith.mulf %270, %251 : vector<8x64xf32>
    %280 = arith.mulf %264, %272 : vector<8x64xf32>
    %281 = arith.addf %279, %280 : vector<8x64xf32>
    %282 = math.tanh %281 : vector<8x64xf32>
    %283 = arith.mulf %278, %282 : vector<8x64xf32>
    %284 = vector.broadcast %c6_i32 : i32 to vector<8x1xi32>
    %285 = arith.cmpi slt, %284, %9 : vector<8x1xi32>
    %286 = vector.shape_cast %285 : vector<8x1xi1> to vector<8x1xi1>
    %287 = vector.broadcast %286 : vector<8x1xi1> to vector<8x64xi1>
    %288 = arith.select %287, %283, %248 : vector<8x64xi1>, vector<8x64xf32>
    %289 = vector.shape_cast %285 : vector<8x1xi1> to vector<8x1xi1>
    %290 = vector.broadcast %289 : vector<8x1xi1> to vector<8x64xi1>
    %291 = arith.select %290, %281, %251 : vector<8x64xi1>, vector<8x64xf32>
    %c7_i32 = arith.constant 7 : i32
    %c8_i32_55 = arith.constant 8 : i32
    %292 = arith.muli %c7_i32, %c8_i32_55 : i32
    %293 = tpu.assume_multiple %292, 8 : i32
    %294 = arith.index_cast %293 : i32 to index
    %c0_56 = arith.constant 0 : index
    %295 = vector.load %arg10[%294, %c0_56] : memref<64x256xf32, #tpu.memory_space<vmem>>, vector<8x256xf32>
    %296 = arith.truncf %288 : vector<8x64xf32> to vector<8x64xbf16>
    %cst_57 = arith.constant dense<0.000000e+00> : vector<8x256xf32>
    %297 = tpu.matmul %296, %8, %cst_57 {dimension_numbers = #tpu.dot_dimension_numbers<[1], [0], [0], [1], [0, 0, 1, 1], [], []>} : vector<8x64xbf16>, vector<64x256xbf16>, vector<8x256xf32> -> vector<8x256xf32>
    %298 = arith.addf %295, %297 : vector<8x256xf32>
    %299 = vector.extract_strided_slice %298 {offsets = [0, 0], sizes = [8, 64], strides = [1, 1]} : vector<8x256xf32> to vector<8x64xf32>
    %300 = arith.negf %299 : vector<8x64xf32>
    %301 = math.exp %300 : vector<8x64xf32>
    %cst_58 = arith.constant 1.000000e+00 : f32
    %302 = vector.broadcast %cst_58 : f32 to vector<8x64xf32>
    %303 = arith.addf %302, %301 : vector<8x64xf32>
    %304 = arith.divf %302, %303 : vector<8x64xf32>
    %305 = vector.extract_strided_slice %298 {offsets = [0, 64], sizes = [8, 64], strides = [1, 1]} : vector<8x256xf32> to vector<8x64xf32>
    %306 = arith.negf %305 : vector<8x64xf32>
    %307 = math.exp %306 : vector<8x64xf32>
    %cst_59 = arith.constant 1.000000e+00 : f32
    %308 = vector.broadcast %cst_59 : f32 to vector<8x64xf32>
    %309 = arith.addf %308, %307 : vector<8x64xf32>
    %310 = arith.divf %308, %309 : vector<8x64xf32>
    %311 = vector.extract_strided_slice %298 {offsets = [0, 128], sizes = [8, 64], strides = [1, 1]} : vector<8x256xf32> to vector<8x64xf32>
    %312 = math.tanh %311 : vector<8x64xf32>
    %313 = vector.extract_strided_slice %298 {offsets = [0, 192], sizes = [8, 64], strides = [1, 1]} : vector<8x256xf32> to vector<8x64xf32>
    %314 = arith.negf %313 : vector<8x64xf32>
    %315 = math.exp %314 : vector<8x64xf32>
    %cst_60 = arith.constant 1.000000e+00 : f32
    %316 = vector.broadcast %cst_60 : f32 to vector<8x64xf32>
    %317 = arith.addf %316, %315 : vector<8x64xf32>
    %318 = arith.divf %316, %317 : vector<8x64xf32>
    %319 = arith.mulf %310, %291 : vector<8x64xf32>
    %320 = arith.mulf %304, %312 : vector<8x64xf32>
    %321 = arith.addf %319, %320 : vector<8x64xf32>
    %322 = math.tanh %321 : vector<8x64xf32>
    %323 = arith.mulf %318, %322 : vector<8x64xf32>
    %324 = vector.broadcast %c7_i32 : i32 to vector<8x1xi32>
    %325 = arith.cmpi slt, %324, %9 : vector<8x1xi32>
    %326 = vector.shape_cast %325 : vector<8x1xi1> to vector<8x1xi1>
    %327 = vector.broadcast %326 : vector<8x1xi1> to vector<8x64xi1>
    %328 = arith.select %327, %323, %288 : vector<8x64xi1>, vector<8x64xf32>
    %329 = vector.shape_cast %325 : vector<8x1xi1> to vector<8x1xi1>
    %330 = vector.broadcast %329 : vector<8x1xi1> to vector<8x64xi1>
    %331 = arith.select %330, %321, %291 : vector<8x64xi1>, vector<8x64xf32>
    %c8_i32_61 = arith.constant 8 : i32
    %332 = arith.truncf %328 : vector<8x64xf32> to vector<8x64xbf16>
    %c0_62 = arith.constant 0 : index
    %c0_63 = arith.constant 0 : index
    %333 = vector.load %arg7[%c0_62, %c0_63] : memref<64x7xbf16, #tpu.memory_space<vmem>>, vector<64x7xbf16>
    %cst_64 = arith.constant dense<0.000000e+00> : vector<8x7xf32>
    %334 = tpu.matmul %332, %333, %cst_64 {dimension_numbers = #tpu.dot_dimension_numbers<[1], [0], [0], [1], [0, 0, 1, 1], [], []>} : vector<8x64xbf16>, vector<64x7xbf16>, vector<8x7xf32> -> vector<8x7xf32>
    %c0_65 = arith.constant 0 : index
    %c0_66 = arith.constant 0 : index
    %335 = vector.load %arg8[%c0_65, %c0_66] : memref<1x7xf32, #tpu.memory_space<vmem>>, vector<1x7xf32>
    %336 = vector.broadcast %335 : vector<1x7xf32> to vector<8x7xf32>
    %337 = arith.addf %334, %336 : vector<8x7xf32>
    %338 = vector.extract_strided_slice %337 {offsets = [0, 0], sizes = [8, 6], strides = [1, 1]} : vector<8x7xf32> to vector<8x6xf32>
    %339 = vector.extract_strided_slice %337 {offsets = [0, 6], sizes = [8, 1], strides = [1, 1]} : vector<8x7xf32> to vector<8x1xf32>
    %cst_67 = arith.constant dense<0xFF800000> : vector<8xf32>
    %340 = vector.multi_reduction <maximumf>, %338, %cst_67 [1] : vector<8x6xf32> to vector<8xf32>
    %341 = vector.shape_cast %340 : vector<8xf32> to vector<8x1xf32>
    %342 = vector.broadcast %341 : vector<8x1xf32> to vector<8x6xf32>
    %343 = arith.subf %338, %342 : vector<8x6xf32>
    %344 = math.exp %343 : vector<8x6xf32>
    %cst_68 = arith.constant dense<0.000000e+00> : vector<8xf32>
    %345 = vector.multi_reduction <add>, %344, %cst_68 [1] : vector<8x6xf32> to vector<8xf32>
    %346 = vector.shape_cast %345 : vector<8xf32> to vector<8x1xf32>
    %347 = math.log %346 : vector<8x1xf32>
    %348 = vector.broadcast %347 : vector<8x1xf32> to vector<8x6xf32>
    %349 = arith.subf %343, %348 : vector<8x6xf32>
    %350 = vector.broadcast %346 : vector<8x1xf32> to vector<8x6xf32>
    %351 = arith.divf %344, %350 : vector<8x6xf32>
    %c0_69 = arith.constant 0 : index
    %c0_70 = arith.constant 0 : index
    %352 = vector.load %arg3[%c0_69, %c0_70] : memref<8x1xi32, #tpu.memory_space<vmem>>, vector<8x1xi32>
    %353 = tpu.iota {dimensions = array<i32: 1>} : vector<8x6xi32>
    %354 = vector.broadcast %352 : vector<8x1xi32> to vector<8x6xi32>
    %355 = arith.cmpi eq, %353, %354 : vector<8x6xi32>
    %356 = arith.extui %355 : vector<8x6xi1> to vector<8x6xi32>
    %357 = arith.sitofp %356 : vector<8x6xi32> to vector<8x6xf32>
    %358 = arith.mulf %357, %349 : vector<8x6xf32>
    %cst_71 = arith.constant dense<0.000000e+00> : vector<8xf32>
    %359 = vector.multi_reduction <add>, %358, %cst_71 [1] : vector<8x6xf32> to vector<8xf32>
    %360 = vector.shape_cast %359 : vector<8xf32> to vector<8x1xf32>
    %361 = arith.mulf %351, %349 : vector<8x6xf32>
    %cst_72 = arith.constant dense<0.000000e+00> : vector<8xf32>
    %362 = vector.multi_reduction <add>, %361, %cst_72 [1] : vector<8x6xf32> to vector<8xf32>
    %363 = vector.shape_cast %362 : vector<8xf32> to vector<8x1xf32>
    %cst_73 = arith.constant 0.000000e+00 : f32
    %364 = vector.broadcast %cst_73 : f32 to vector<8x1xf32>
    %365 = arith.subf %364, %363 : vector<8x1xf32>
    %366 = tpu.iota {dimensions = array<i32: 1>} : vector<8x128xi32>
    %c0_i32_74 = arith.constant 0 : i32
    %367 = vector.broadcast %c0_i32_74 : i32 to vector<8x128xi32>
    %368 = arith.cmpi eq, %366, %367 : vector<8x128xi32>
    %c1_i32_75 = arith.constant 1 : i32
    %369 = vector.broadcast %c1_i32_75 : i32 to vector<8x128xi32>
    %370 = arith.cmpi eq, %366, %369 : vector<8x128xi32>
    %c2_i32_76 = arith.constant 2 : i32
    %371 = vector.broadcast %c2_i32_76 : i32 to vector<8x128xi32>
    %372 = arith.cmpi eq, %366, %371 : vector<8x128xi32>
    %cst_77 = arith.constant 0.000000e+00 : f32
    %373 = vector.shape_cast %365 : vector<8x1xf32> to vector<8x1xf32>
    %374 = vector.broadcast %373 : vector<8x1xf32> to vector<8x128xf32>
    %375 = vector.broadcast %cst_77 : f32 to vector<8x128xf32>
    %376 = arith.select %372, %374, %375 : vector<8x128xi1>, vector<8x128xf32>
    %377 = vector.shape_cast %339 : vector<8x1xf32> to vector<8x1xf32>
    %378 = vector.broadcast %377 : vector<8x1xf32> to vector<8x128xf32>
    %379 = arith.select %370, %378, %376 : vector<8x128xi1>, vector<8x128xf32>
    %380 = vector.shape_cast %360 : vector<8x1xf32> to vector<8x1xf32>
    %381 = vector.broadcast %380 : vector<8x1xf32> to vector<8x128xf32>
    %382 = arith.select %368, %381, %379 : vector<8x128xi1>, vector<8x128xf32>
    %c0_78 = arith.constant 0 : index
    %c0_79 = arith.constant 0 : index
    %383 = vector.load %arg9[%c0_78, %c0_79] : memref<8x128xf32, #tpu.memory_space<vmem>>, vector<8x128xf32>
    tpu.vector_store %arg9[%c0_78, %c0_79], %382 {strides = array<i32>} : memref<8x128xf32, #tpu.memory_space<vmem>>, vector<8x128xf32>,
    return
  }
  func.func @transform_0(%arg0: i32) -> (i32, i32, i32) {
    %c0_i32 = arith.constant 0 : i32
    %c0_i32_0 = arith.constant 0 : i32
    %c0_i32_1 = arith.constant 0 : i32
    return %c0_i32, %arg0, %c0_i32_0 : i32, i32, i32
  }
  func.func @transform_1(%arg0: i32) -> (i32, i32) {
    %c0_i32 = arith.constant 0 : i32
    %c0_i32_0 = arith.constant 0 : i32
    return %arg0, %c0_i32 : i32, i32
  }
  func.func @transform_2(%arg0: i32) -> (i32, i32) {
    %c0_i32 = arith.constant 0 : i32
    %c0_i32_0 = arith.constant 0 : i32
    return %arg0, %c0_i32 : i32, i32
  }
  func.func @transform_3(%arg0: i32) -> (i32, i32) {
    %c0_i32 = arith.constant 0 : i32
    %c0_i32_0 = arith.constant 0 : i32
    %c0_i32_1 = arith.constant 0 : i32
    return %c0_i32, %c0_i32_0 : i32, i32
  }
  func.func @transform_4(%arg0: i32) -> (i32, i32) {
    %c0_i32 = arith.constant 0 : i32
    %c0_i32_0 = arith.constant 0 : i32
    %c0_i32_1 = arith.constant 0 : i32
    return %c0_i32, %c0_i32_0 : i32, i32
  }
  func.func @transform_5(%arg0: i32) -> (i32, i32) {
    %c0_i32 = arith.constant 0 : i32
    %c0_i32_0 = arith.constant 0 : i32
    %c0_i32_1 = arith.constant 0 : i32
    return %c0_i32, %c0_i32_0 : i32, i32
  }
  func.func @transform_6(%arg0: i32) -> (i32, i32) {
    %c0_i32 = arith.constant 0 : i32
    %c0_i32_0 = arith.constant 0 : i32
    %c0_i32_1 = arith.constant 0 : i32
    return %c0_i32, %c0_i32_0 : i32, i32
  }
  func.func @transform_7(%arg0: i32) -> (i32, i32) {
    %c0_i32 = arith.constant 0 : i32
    %c0_i32_0 = arith.constant 0 : i32
    %c0_i32_1 = arith.constant 0 : i32
    return %c0_i32, %c0_i32_0 : i32, i32
  }
  func.func @transform_8(%arg0: i32) -> (i32, i32) {
    %c0_i32 = arith.constant 0 : i32
    %c0_i32_0 = arith.constant 0 : i32
    return %arg0, %c0_i32 : i32, i32
  }
}

</mosaic_0001>

<bundles_post_ra>
// kernel: actor_critic_evaluate.1
= control target key start
LH: loop header
LB: loop body
LE: loop exit
PB: predicated region body
PF: predicated region fallthrough
CT: control target
= control target key end

     0   :  { %v1300_v1 = vmov 0   ;;  %vm118_vm0 = vcmask 523264   ;;  %v48_v18 = vlaneseq  ;;  %s1301_s18 = smov 64   ;;  %s1642_s3 = inlined_call_operand.vmem [shape: bf16[64,256], index: 3, kind: input, shape index: {}]   ;;  %s1643_s5 = inlined_call_operand.vmem [shape: bf16[64,256], index: 5, kind: input, shape index: {}]   ;;  %s1644_s0 = inlined_call_operand.vmem [shape: bf16[8,8,64], index: 0, kind: input, shape index: {}]   ;;  %s1645_s4 = inlined_call_operand.vmem [shape: f32[1,256], index: 4, kind: input, shape index: {}]   ;;  %s1646_s1 = inlined_call_operand.vmem [shape: s32[8,1], index: 1, kind: input, shape index: {}]   ;;  %s1647_s6 = inlined_call_operand.vmem [shape: bf16[64,7], index: 6, kind: input, shape index: {}]   ;;  %s1648_s7 = inlined_call_operand.vmem [shape: f32[1,7], index: 7, kind: input, shape index: {}]   ;;  %s1649_s2 = inlined_call_operand.vmem [shape: s32[8,1], index: 2, kind: input, shape index: {}]   ;;  %s1650_s8 = inlined_call_operand.vmem [shape: f32[8,128], index: 8, kind: output, shape index: {}]  }
   0x1   :  { %v1166_v0 = vld [vmem:[%s1642_s3 + $0x34] ss:$8 sps:$4 sm:$0xff]   ;;  %163 = vmatprep.mubr.bf16.mxu0 %v1300_v1  ;;  %309 = vmatprep.mubr.bf16.mxu1 %v1300_v1  ;;  %v1170_v3 = vld [vmem:[%s1642_s3 + $0x30] ss:$8 sps:$4 sm:$0xff]   ;;  %v1172_v5 = vld [vmem:[%s1642_s3 + $0x24] ss:$8 sps:$4 sm:$0xff]  }
   0x2   :  { %v1358_v2 = vld [vmem:[%s1643_s5 + $0x34] ss:$8 sps:$4 sm:$0xff]   ;;  %1162 = vset.pattern.permute.xlu0 %v1300_v1  ;;  %1163 = vset.pattern.permute.xlu1 %v1300_v1  ;;  %v1368_v4 = vld [vmem:[%s1643_s5 + $0x30] ss:$8 sps:$4 sm:$0xff]   ;;  %v1378_v6 = vld [vmem:[%s1643_s5 + $0x24] ss:$8 sps:$4 sm:$0xff]  }
   0x3   :  { %139 = vmatprep.subr.bf16.mxu0 %v1166_v0  ;;  %285 = vmatprep.subr.bf16.mxu1 %v1358_v2  ;;  %v1176_v7 = vld [vmem:[%s1642_s3 + $0x20] ss:$8 sps:$4 sm:$0xff]   ;;  %v1178_v9 = vld [vmem:[%s1642_s3 + $0x14] ss:$8 sps:$4 sm:$0xff]   ;;  %v1182_v11 = vld [vmem:[%s1642_s3 + $0x10] ss:$8 sps:$4 sm:$0xff]  }
   0x4   :  { %140 = vmatpush1.bf16.msra.mxu0 %v1170_v3  ;;  %286 = vmatpush1.bf16.msra.mxu1 %v1368_v4  ;;  %v1386_v8 = vld [vmem:[%s1643_s5 + $0x20] ss:$8 sps:$4 sm:$0xff]   ;;  %v1395_v10 = vld [vmem:[%s1643_s5 + $0x14] ss:$8 sps:$4 sm:$0xff]   ;;  %v1403_v12 = vld [vmem:[%s1643_s5 + $0x10] ss:$8 sps:$4 sm:$0xff]  }
   0x5   :  { %141 = vmatprep.subr.bf16.mxu0 %v1172_v5  ;;  %287 = vmatprep.subr.bf16.mxu1 %v1378_v6  ;;  %v1184_v13 = vld [vmem:[%s1642_s3 + $0x4] ss:$8 sps:$4 sm:$0xff]   ;;  %v1188_v15 = vld [vmem:[%s1642_s3] ss:$8 sps:$4 sm:$0xff]   ;;  %v49_v19 = vshrl.u32 %v48_v18, 7 }
   0x6   :  { %v1413_v14 = vld [vmem:[%s1643_s5 + $0x4] ss:$8 sps:$4 sm:$0xff]   ;;  %v1421_v16 = vld [vmem:[%s1643_s5] ss:$8 sps:$4 sm:$0xff]  }
   0x7   :  { %v1190_v17 = vld [vmem:[%s1644_s0] sm:$0xff]   ;;  %v50_v20 = vsub.s32 0, %v49_v19  ;;  %v54_v30 = vsub.s32 1, %v49_v19 }
   0x8   :  { %142 = vmatpush1.bf16.msra.mxu0 %v1176_v7  ;;  %288 = vmatpush1.bf16.msra.mxu1 %v1386_v8  ;;  %v46_v21 = vld [vmem:[%s1645_s4] sm:$0x3] }
   0x9   :  { %143 = vmatprep.subr.bf16.mxu0 %v1178_v9  ;;  %289 = vmatprep.subr.bf16.mxu1 %v1395_v10  ;;  %v1455_v22 = vrot.slane %v46_v21, %v50_v20  ;;  %v1458_v32 = vrot.slane %v46_v21, %v54_v30  ;;  %v1464_v38 = vld [vmem:[%s1646_s1] sm:$0xff]  ;;  %v1191_v20 = vld [vmem:[%s1644_s0 + $0x8] sm:$0xff]   ;;  %v1192_v21 = vld [vmem:[%s1644_s0 + $0x10] sm:$0xff]  }
   0xa   :  { %vm342_vm1 = vcmp.gt.s32.totalorder %v1464_v38, 0  ;;  %vm427_vm3 = vcmp.gt.s32.totalorder %v1464_v38, 1  ;;  %vm512_vm5 = vcmp.gt.s32.totalorder %v1464_v38, 2  ;;  %vm597_vm7 = vcmp.gt.s32.totalorder %v1464_v38, 3 }
   0xb   :  { %v343_v42 = vsel %vm342_vm1, 1, %v1300_v1  ;;  %v428_v19 = vsel %vm427_vm3, 1, %v1300_v1  ;;  %vm682_vm9 = vcmp.gt.s32.totalorder %v1464_v38, 4  ;;  %vm767_vm11 = vcmp.gt.s32.totalorder %v1464_v38, 5 }
   0xc   :  { %144 = vmatpush1.bf16.msra.mxu0 %v1182_v11  ;;  %290 = vmatpush1.bf16.msra.mxu1 %v1403_v12  ;;  %vm852_vm13 = vcmp.gt.s32.totalorder %v1464_v38, 6  ;;  %vm937_vm15 = vcmp.gt.s32.totalorder %v1464_v38, 7  ;;  %vm1303_vm1 = vmmov 0   ;;  %vm1030_vm3 = vcmask 48128  }
   0xd   :  { %145 = vmatprep.subr.bf16.mxu0 %v1184_v13  ;;  %291 = vmatprep.subr.bf16.mxu1 %v1413_v14 }
  0x10   :  { %146 = vmatpush1.bf16.msra.mxu0 %v1188_v15  ;;  %292 = vmatpush1.bf16.msra.mxu1 %v1421_v16 }
  0x11   :  { %370 = vmatprep.subr.bf16.mxu1 %v1358_v2  ;;  %455 = vmatprep.subr.bf16.mxu0 %v1358_v2 }
  0x13   :  { %1098 = vmatmul.mubr.msk.bf16.vlgmr.msra.gmra.mxu0 %vm118_vm0, %v1190_v17  ;;  %310 = vmatmul.mubr.bf16.vlgmr.msra.gmra.mxu1 %v1300_v1 }
  0x14   :  { %371 = vmatpush1.bf16.msra.mxu1 %v1368_v4  ;;  %394 = vmatprep.mubr.bf16.mxu1 %v1300_v1 }
  0x15   :  { %372 = vmatprep.subr.bf16.mxu1 %v1378_v6  ;;  %456 = vmatpush1.bf16.msra.mxu0 %v1368_v4 }
  0x16   :  { %173 = vmatprep.mubr.bf16.mxu0 %v1300_v1  ;;  %457 = vmatprep.subr.bf16.mxu0 %v1378_v6 }
  0x18   :  { %373 = vmatpush1.bf16.msra.mxu1 %v1386_v8 }
  0x19   :  { %374 = vmatprep.subr.bf16.mxu1 %v1395_v10  ;;  %458 = vmatpush1.bf16.msra.mxu0 %v1386_v8 }
  0x1a   :  { %459 = vmatprep.subr.bf16.mxu0 %v1395_v10 }
  0x1b   :  { %1099 = vmatmul.mubr.msk.bf16.gmra.mxu0 %vm118_vm0, %v1191_v20 }
  0x1c   :  { %375 = vmatpush1.bf16.msra.mxu1 %v1403_v12  ;;  %183 = vmatprep.mubr.bf16.mxu0 %v1300_v1 }
  0x1d   :  { %376 = vmatprep.subr.bf16.mxu1 %v1413_v14  ;;  %460 = vmatpush1.bf16.msra.mxu0 %v1403_v12 }
  0x1e   :  { %461 = vmatprep.subr.bf16.mxu0 %v1413_v14 }
  0x20   :  { %377 = vmatpush1.bf16.msra.mxu1 %v1421_v16 }
  0x21   :  { %462 = vmatpush1.bf16.msra.mxu0 %v1421_v16  ;;  %540 = vmatprep.subr.bf16.mxu1 %v1358_v2 }
  0x22   :  { %625 = vmatprep.subr.bf16.mxu0 %v1358_v2 }
  0x23   :  { %1100 = vmatmul.mubr.msk.bf16.gmra.mxu0 %vm118_vm0, %v1192_v21 }
  0x24   :  { %193 = vmatprep.mubr.bf16.mxu0 %v1300_v1 }
  0xd3   :  { %v165_v23 = vpop.f32.mrf.mxu0  ;;  %v311_v24 = vpop.f32.mrf.mxu1 }
  0xd4   :  { %v166_v25 = vadd.f32 %v165_v23, %v1455_v22  ;;  %v1193_v23 = vld [vmem:[%s1644_s0 + $0x18] sm:$0xff]  }
  0xd5   :  { %v313_v26 = vpop.f32.mrf.mxu1  ;;  %v167_v33 = vpop.f32.mrf.mxu0  ;;  %1101 = vmatmul.mubr.msk.bf16.gmra.mxu0 %vm118_vm0, %v1193_v23 }
  0xd6   :  { %v318_v27 = vadd.f32 %v311_v24, %v166_v25  ;;  %v168_v34 = vadd.f32 %v167_v33, %v1458_v32  ;;  %479 = vmatprep.mubr.bf16.mxu0 %v1300_v1 }
  0xd7   :  { %v315_v28 = vpop.f32.mrf.mxu1  ;;  %v169_v57 = vpop.f32.mrf.mxu0 }
  0xd8   :  { %v1110_v29 = vmul.f32 -1.442695, %v318_v27  ;;  %v319_v35 = vadd.f32 %v313_v26, %v168_v34  ;;  %v170_v58 = vadd.f32 %v169_v57, %v1455_v22 }
  0xd9   :  { %v316_v31 = vpop.f32.mrf.mxu1  ;;  %v171_v3 = vpop.f32.mrf.mxu0 }
  0xda   :  { %1198 = vpow2.f32 %v1110_v29  ;;  %v1111_v43 = vmul.f32 -1.442695, %v319_v35  ;;  %v172_v5 = vadd.f32 %v171_v3, %v1458_v32 }
  0xdb   :  { %1200 = vtanh.f32 %v319_v35 }
  0xe7   :  { %v1199_v36 = vpop.eup %1198 }
  0xe8   :  { %v323_v37 = vadd.f32 1.0, %v1199_v36  ;;  %v1201_v39 = vpop.eup %1200 }
  0xea   :  { %1202 = vrcp.f32 %v323_v37 }
  0xeb   :  { %1204 = vpow2.f32 %v1111_v43 }
  0xf7   :  { %v1203_v40 = vpop.eup %1202 }
  0xf8   :  { %v334_v41 = vmul.f32 %v1203_v40, %v1201_v39  ;;  %v1205_v44 = vpop.eup %1204  ;;  %v333_v46 = vmul.f32 0.0, %v1203_v40  ;;  %v513_v39 = vsel %vm512_vm5, 1, %v1300_v1 }
  0xf9   :  { %v330_v45 = vadd.f32 1.0, %v1205_v44 }
  0xfa   :  { %336 = vrot.lane.b32.xlu0 %v334_v41, %s1301_s18  ;;  %v175_v41 = vpop.f32.mrf.mxu0 }
  0xfb   :  { %1206 = vrcp.f32 %v330_v45 }
  0xfe   :  { %345 = vperm.xlu0 %1162, %v343_v42   ;;  %v177_v42 = vpop.f32.mrf.mxu0 }
 0x100   :  { %v179_v43 = vpop.f32.mrf.mxu0 }
 0x102   :  { %v1517_v44 = vpop.f32.mrf.mxu0 }
 0x104   :  { %v1519_v45 = vpop.f32.mrf.mxu0 }
 0x108   :  { %v1207_v50 = vpop.eup %1206 }
 0x16c   :  { %v337_v47 = vpop.permute.xlu0 %336 }
 0x16d   :  { %v339_v48 = vadd.f32 %v337_v47, %v333_v46  ;;  %v1521_v46 = vpop.f32.mrf.mxu0 }
 0x16f   :  { %1208 = vtanh.f32 %v339_v48  ;;  %v1523_v47 = vpop.f32.mrf.mxu0 }
 0x179   :  { %v346_v49 = vpop.permute.xlu0 %345 }
 0x17a   :  { %vm347_vm2 = vcmp.eq.s32.totalorder %v346_v49, 1 }
 0x17b   :  { %v349_v51 = vsel %vm347_vm2, %v339_v48, 0.0  ;;  %v1525_v48 = vpop.f32.mrf.mxu0 }
 0x17c   :  { %v1209_v52 = vpop.eup %1208 }
 0x17d   :  { %v341_v53 = vmul.f32 %v1209_v52, %v1207_v50 }
 0x17f   :  { %v348_v54 = vsel %vm347_vm2, %v341_v53, 0.0  ;;  %v176_v53 = vadd.f32 %v175_v41, %v1455_v22 }
 0x180   :  { %v355_v55 = vpack.c.bf16 %v348_v54, %v348_v54 }
 0x182   :  { %357 = vrot.lane.b32.xlu1 %v355_v55, %s1301_s18 }
 0x195   :  { %v1527_v49 = vpop.f32.mrf.mxu0 }
 0x197   :  { %v1529_v50 = vpop.f32.mrf.mxu0 }
 0x1f4   :  { %v358_v56 = vpop.permute.xlu1 %357 }
 0x1f5   :  { %1112 = vmatmul.mubr.msk.bf16.vlgmr.msra.gmra.mxu1 %vm118_vm0, %v358_v56 }
 0x1f6   :  { %541 = vmatpush1.bf16.msra.mxu1 %v1368_v4  ;;  %564 = vmatprep.mubr.bf16.mxu1 %v1300_v1 }
 0x1f7   :  { %542 = vmatprep.subr.bf16.mxu1 %v1378_v6 }
 0x1fa   :  { %543 = vmatpush1.bf16.msra.mxu1 %v1386_v8 }
 0x1fb   :  { %544 = vmatprep.subr.bf16.mxu1 %v1395_v10 }
 0x1fe   :  { %545 = vmatpush1.bf16.msra.mxu1 %v1403_v12 }
 0x1ff   :  { %546 = vmatprep.subr.bf16.mxu1 %v1413_v14 }
 0x202   :  { %547 = vmatpush1.bf16.msra.mxu1 %v1421_v16 }
 0x203   :  { %710 = vmatprep.subr.bf16.mxu1 %v1358_v2 }
 0x2b5   :  { %v396_v59 = vpop.f32.mrf.mxu1 }
 0x2b6   :  { %v403_v60 = vadd.f32 %v396_v59, %v170_v58 }
 0x2b7   :  { %v398_v61 = vpop.f32.mrf.mxu1 }
 0x2b8   :  { %v1113_v62 = vmul.f32 -1.442695, %v403_v60  ;;  %v404_v7 = vadd.f32 %v398_v61, %v172_v5  ;;  %v178_v60 = vadd.f32 %v177_v42, %v1458_v32 }
 0x2b9   :  { %v400_v63 = vpop.f32.mrf.mxu1 }
 0x2ba   :  { %1210 = vpow2.f32 %v1113_v62  ;;  %v1114_v24 = vmul.f32 -1.442695, %v404_v7 }
 0x2bb   :  { %v401_v0 = vpop.f32.mrf.mxu1  ;;  %1212 = vtanh.f32 %v404_v7 }
 0x2c7   :  { %v1211_v9 = vpop.eup %1210 }
 0x2c8   :  { %v408_v11 = vadd.f32 1.0, %v1211_v9  ;;  %v1213_v13 = vpop.eup %1212 }
 0x2ca   :  { %1214 = vrcp.f32 %v408_v11 }
 0x2cb   :  { %1216 = vpow2.f32 %v1114_v24 }
 0x2d7   :  { %v1215_v15 = vpop.eup %1214 }
 0x2d8   :  { %v419_v17 = vmul.f32 %v1215_v15, %v1213_v13  ;;  %v1217_v25 = vpop.eup %1216  ;;  %v418_v27 = vmul.f32 %v1215_v15, %v349_v51 }
 0x2d9   :  { %v415_v26 = vadd.f32 1.0, %v1217_v25 }
 0x2da   :  { %421 = vrot.lane.b32.xlu1 %v419_v17, %s1301_s18 }
 0x2db   :  { %1218 = vrcp.f32 %v415_v26 }
 0x2de   :  { %430 = vperm.xlu1 %1163, %v428_v19  }
 0x2e8   :  { %v1219_v31 = vpop.eup %1218 }
 0x34c   :  { %v422_v28 = vpop.permute.xlu1 %421 }
 0x34d   :  { %v424_v29 = vadd.f32 %v422_v28, %v418_v27  ;;  %v598_v27 = vsel %vm597_vm7, 1, %v1300_v1 }
 0x34f   :  { %1220 = vtanh.f32 %v424_v29 }
 0x359   :  { %v431_v30 = vpop.permute.xlu1 %430 }
 0x35a   :  { %vm432_vm4 = vcmp.eq.s32.totalorder %v431_v30, 1 }
 0x35b   :  { %v434_v33 = vsel %vm432_vm4, %v424_v29, %v349_v51  ;;  %v1531_v51 = vpop.f32.mrf.mxu0  ;;  %v180_v29 = vadd.f32 %v179_v43, %v1455_v22 }
 0x35c   :  { %v1221_v34 = vpop.eup %1220 }
 0x35d   :  { %v426_v35 = vmul.f32 %v1221_v34, %v1219_v31  ;;  %v1533_v52 = vpop.f32.mrf.mxu0 }
 0x35e   :  { %v202_v38 = vadd.f32 %v1533_v52, %v1458_v32  ;;  %v1196_v52 = vld [vmem:[%s1647_s6 + $0x8] sm:$0xff]  }
 0x35f   :  { %v1500_v36 = vsel %vm432_vm4, %v426_v35, %v348_v54 }
 0x360   :  { %v440_v37 = vpack.c.bf16 %v1500_v36, %v1500_v36 }
 0x362   :  { %442 = vrot.lane.b32.xlu0 %v440_v37, %s1301_s18  ;;  %v182_v37 = vadd.f32 %v1517_v44, %v1458_v32 }
 0x366   :  { %515 = vperm.xlu0 %1162, %v513_v39  }
 0x3d4   :  { %v443_v40 = vpop.permute.xlu0 %442 }
 0x3d5   :  { %1115 = vmatmul.mubr.msk.bf16.vlgmr.msra.gmra.mxu0 %vm118_vm0, %v443_v40 }
 0x3d6   :  { %626 = vmatpush1.bf16.msra.mxu0 %v1368_v4  ;;  %649 = vmatprep.mubr.bf16.mxu0 %v1300_v1 }
 0x3d7   :  { %627 = vmatprep.subr.bf16.mxu0 %v1378_v6 }
 0x3da   :  { %628 = vmatpush1.bf16.msra.mxu0 %v1386_v8 }
 0x3db   :  { %629 = vmatprep.subr.bf16.mxu0 %v1395_v10 }
 0x3de   :  { %630 = vmatpush1.bf16.msra.mxu0 %v1403_v12 }
 0x3df   :  { %631 = vmatprep.subr.bf16.mxu0 %v1413_v14 }
 0x3e1   :  { %v516_v13 = vpop.permute.xlu0 %515 }
 0x3e2   :  { %632 = vmatpush1.bf16.msra.mxu0 %v1421_v16  ;;  %vm517_vm6 = vcmp.eq.s32.totalorder %v516_v13, 1 }
 0x3e3   :  { %795 = vmatprep.subr.bf16.mxu0 %v1358_v2 }
 0x495   :  { %v481_v54 = vpop.f32.mrf.mxu0 }
 0x496   :  { %v488_v55 = vadd.f32 %v481_v54, %v176_v53 }
 0x497   :  { %v483_v56 = vpop.f32.mrf.mxu0 }
 0x498   :  { %v1116_v57 = vmul.f32 -1.442695, %v488_v55  ;;  %v489_v61 = vadd.f32 %v483_v56, %v178_v60 }
 0x499   :  { %v485_v58 = vpop.f32.mrf.mxu0 }
 0x49a   :  { %1222 = vpow2.f32 %v1116_v57  ;;  %v1117_v7 = vmul.f32 -1.442695, %v489_v61 }
 0x49b   :  { %v486_v59 = vpop.f32.mrf.mxu0  ;;  %1224 = vtanh.f32 %v489_v61 }
 0x4a7   :  { %v1223_v62 = vpop.eup %1222 }
 0x4a8   :  { %v493_v63 = vadd.f32 1.0, %v1223_v62  ;;  %v1225_v0 = vpop.eup %1224 }
 0x4aa   :  { %1226 = vrcp.f32 %v493_v63 }
 0x4ab   :  { %1228 = vpow2.f32 %v1117_v7  ;;  %v186_v7 = vadd.f32 %v1519_v45, %v1455_v22 }
 0x4b7   :  { %v1227_v3 = vpop.eup %1226 }
 0x4b8   :  { %v504_v5 = vmul.f32 %v1227_v3, %v1225_v0  ;;  %v1229_v9 = vpop.eup %1228  ;;  %v503_v15 = vmul.f32 %v1227_v3, %v434_v33  ;;  %v683_v3 = vsel %vm682_vm9, 1, %v1300_v1 }
 0x4b9   :  { %v500_v11 = vadd.f32 1.0, %v1229_v9 }
 0x4ba   :  { %506 = vrot.lane.b32.xlu1 %v504_v5, %s1301_s18 }
 0x4bb   :  { %1230 = vrcp.f32 %v500_v11 }
 0x4c8   :  { %v1231_v21 = vpop.eup %1230 }
 0x52c   :  { %v507_v17 = vpop.permute.xlu1 %506 }
 0x52d   :  { %v509_v19 = vadd.f32 %v507_v17, %v503_v15 }
 0x52f   :  { %1232 = vtanh.f32 %v509_v19  ;;  %v519_v20 = vsel %vm517_vm6, %v509_v19, %v434_v33 }
 0x53c   :  { %v1233_v23 = vpop.eup %1232 }
 0x53d   :  { %v511_v24 = vmul.f32 %v1233_v23, %v1231_v21 }
 0x53f   :  { %v518_v25 = vsel %vm517_vm6, %v511_v24, %v1500_v36 }
 0x540   :  { %v525_v26 = vpack.c.bf16 %v518_v25, %v518_v25 }
 0x542   :  { %527 = vrot.lane.b32.xlu1 %v525_v26, %s1301_s18 }
 0x546   :  { %600 = vperm.xlu1 %1163, %v598_v27  }
 0x5b4   :  { %v528_v28 = vpop.permute.xlu1 %527 }
 0x5b5   :  { %1118 = vmatmul.mubr.msk.bf16.vlgmr.msra.gmra.mxu1 %vm118_vm0, %v528_v28 }
 0x5b6   :  { %711 = vmatpush1.bf16.msra.mxu1 %v1368_v4  ;;  %734 = vmatprep.mubr.bf16.mxu1 %v1300_v1 }
 0x5b7   :  { %712 = vmatprep.subr.bf16.mxu1 %v1378_v6 }
 0x5ba   :  { %713 = vmatpush1.bf16.msra.mxu1 %v1386_v8 }
 0x5bb   :  { %714 = vmatprep.subr.bf16.mxu1 %v1395_v10 }
 0x5be   :  { %715 = vmatpush1.bf16.msra.mxu1 %v1403_v12 }
 0x5bf   :  { %716 = vmatprep.subr.bf16.mxu1 %v1413_v14 }
 0x5c1   :  { %v601_v56 = vpop.permute.xlu1 %600 }
 0x5c2   :  { %717 = vmatpush1.bf16.msra.mxu1 %v1421_v16  ;;  %vm602_vm8 = vcmp.eq.s32.totalorder %v601_v56, 1 }
 0x5c3   :  { %880 = vmatprep.subr.bf16.mxu1 %v1358_v2 }
 0x675   :  { %v566_v30 = vpop.f32.mrf.mxu1 }
 0x676   :  { %v573_v31 = vadd.f32 %v566_v30, %v180_v29 }
 0x677   :  { %v568_v33 = vpop.f32.mrf.mxu1 }
 0x678   :  { %v1119_v34 = vmul.f32 -1.442695, %v573_v31  ;;  %v574_v39 = vadd.f32 %v568_v33, %v182_v37 }
 0x679   :  { %v570_v35 = vpop.f32.mrf.mxu1 }
 0x67a   :  { %1234 = vpow2.f32 %v1119_v34  ;;  %v1120_v43 = vmul.f32 -1.442695, %v574_v39 }
 0x67b   :  { %v571_v36 = vpop.f32.mrf.mxu1  ;;  %1236 = vtanh.f32 %v574_v39 }
 0x687   :  { %v1235_v40 = vpop.eup %1234 }
 0x688   :  { %v578_v41 = vadd.f32 1.0, %v1235_v40  ;;  %v1237_v42 = vpop.eup %1236 }
 0x68a   :  { %1238 = vrcp.f32 %v578_v41  ;;  %v768_v41 = vsel %vm767_vm11, 1, %v1300_v1 }
 0x68b   :  { %1240 = vpow2.f32 %v1120_v43 }
 0x697   :  { %v1239_v53 = vpop.eup %1238 }
 0x698   :  { %v589_v2 = vmul.f32 %v1239_v53, %v1237_v42  ;;  %v1241_v54 = vpop.eup %1240  ;;  %v588_v57 = vmul.f32 %v1239_v53, %v519_v20  ;;  %v190_v53 = vadd.f32 %v1523_v47, %v1455_v22 }
 0x699   :  { %v585_v55 = vadd.f32 1.0, %v1241_v54 }
 0x69a   :  { %591 = vrot.lane.b32.xlu0 %v589_v2, %s1301_s18 }
 0x69b   :  { %1242 = vrcp.f32 %v585_v55 }
 0x6a8   :  { %v1243_v60 = vpop.eup %1242 }
 0x70c   :  { %v592_v58 = vpop.permute.xlu0 %591 }
 0x70d   :  { %v594_v59 = vadd.f32 %v592_v58, %v588_v57 }
 0x70f   :  { %1244 = vtanh.f32 %v594_v59  ;;  %v604_v44 = vsel %vm602_vm8, %v594_v59, %v519_v20  ;;  %v188_v20 = vadd.f32 %v1521_v46, %v1458_v32 }
 0x71c   :  { %v1245_v61 = vpop.eup %1244 }
 0x71d   :  { %v596_v62 = vmul.f32 %v1245_v61, %v1243_v60 }
 0x71f   :  { %v603_v63 = vsel %vm602_vm8, %v596_v62, %v518_v25 }
 0x720   :  { %v610_v0 = vpack.c.bf16 %v603_v63, %v603_v63 }
 0x722   :  { %612 = vrot.lane.b32.xlu0 %v610_v0, %s1301_s18 }
 0x726   :  { %685 = vperm.xlu0 %1162, %v683_v3  }
 0x794   :  { %v613_v5 = vpop.permute.xlu0 %612 }
 0x795   :  { %1121 = vmatmul.mubr.msk.bf16.vlgmr.msra.gmra.mxu0 %vm118_vm0, %v613_v5 }
 0x796   :  { %796 = vmatpush1.bf16.msra.mxu0 %v1368_v4  ;;  %819 = vmatprep.mubr.bf16.mxu0 %v1300_v1 }
 0x797   :  { %797 = vmatprep.subr.bf16.mxu0 %v1378_v6 }
 0x79a   :  { %798 = vmatpush1.bf16.msra.mxu0 %v1386_v8 }
 0x79b   :  { %799 = vmatprep.subr.bf16.mxu0 %v1395_v10 }
 0x79e   :  { %800 = vmatpush1.bf16.msra.mxu0 %v1403_v12 }
 0x79f   :  { %801 = vmatprep.subr.bf16.mxu0 %v1413_v14 }
 0x7a1   :  { %v686_v30 = vpop.permute.xlu0 %685 }
 0x7a2   :  { %802 = vmatpush1.bf16.msra.mxu0 %v1421_v16  ;;  %vm687_vm10 = vcmp.eq.s32.totalorder %v686_v30, 1 }
 0x855   :  { %v651_v9 = vpop.f32.mrf.mxu0 }
 0x856   :  { %v658_v11 = vadd.f32 %v651_v9, %v186_v7  ;;  %v853_v9 = vsel %vm852_vm13, 1, %v1300_v1 }
 0x857   :  { %v653_v13 = vpop.f32.mrf.mxu0 }
 0x858   :  { %v1122_v15 = vmul.f32 -1.442695, %v658_v11  ;;  %v659_v21 = vadd.f32 %v653_v13, %v188_v20  ;;  %v196_v13 = vadd.f32 %v1527_v49, %v1455_v22 }
 0x859   :  { %v655_v17 = vpop.f32.mrf.mxu0 }
 0x85a   :  { %1246 = vpow2.f32 %v1122_v15  ;;  %v1123_v45 = vmul.f32 -1.442695, %v659_v21 }
 0x85b   :  { %v656_v19 = vpop.f32.mrf.mxu0  ;;  %1248 = vtanh.f32 %v659_v21 }
 0x867   :  { %v1247_v23 = vpop.eup %1246 }
 0x868   :  { %v663_v24 = vadd.f32 1.0, %v1247_v23  ;;  %v1249_v25 = vpop.eup %1248 }
 0x86a   :  { %1250 = vrcp.f32 %v663_v24  ;;  %v198_v24 = vadd.f32 %v1529_v50, %v1458_v32 }
 0x86b   :  { %1252 = vpow2.f32 %v1123_v45 }
 0x877   :  { %v1251_v26 = vpop.eup %1250 }
 0x878   :  { %v674_v27 = vmul.f32 %v1251_v26, %v1249_v25  ;;  %v1253_v28 = vpop.eup %1252  ;;  %v673_v31 = vmul.f32 %v1251_v26, %v604_v44 }
 0x879   :  { %v670_v29 = vadd.f32 1.0, %v1253_v28 }
 0x87a   :  { %676 = vrot.lane.b32.xlu1 %v674_v27, %s1301_s18 }
 0x87b   :  { %1254 = vrcp.f32 %v670_v29 }
 0x888   :  { %v1255_v35 = vpop.eup %1254 }
 0x8ec   :  { %v677_v33 = vpop.permute.xlu1 %676 }
 0x8ed   :  { %v679_v34 = vadd.f32 %v677_v33, %v673_v31 }
 0x8ef   :  { %1256 = vtanh.f32 %v679_v34  ;;  %v689_v46 = vsel %vm687_vm10, %v679_v34, %v604_v44 }
 0x8fc   :  { %v1257_v36 = vpop.eup %1256 }
 0x8fd   :  { %v681_v37 = vmul.f32 %v1257_v36, %v1255_v35 }
 0x8ff   :  { %v688_v39 = vsel %vm687_vm10, %v681_v37, %v603_v63 }
 0x900   :  { %v695_v40 = vpack.c.bf16 %v688_v39, %v688_v39 }
 0x902   :  { %697 = vrot.lane.b32.xlu1 %v695_v40, %s1301_s18 }
 0x906   :  { %770 = vperm.xlu1 %1163, %v768_v41  }
 0x974   :  { %v698_v42 = vpop.permute.xlu1 %697 }
 0x975   :  { %1124 = vmatmul.mubr.msk.bf16.vlgmr.msra.gmra.mxu1 %vm118_vm0, %v698_v42  ;;  %v938_v42 = vsel %vm937_vm15, 1, %v1300_v1 }
 0x976   :  { %881 = vmatpush1.bf16.msra.mxu1 %v1368_v4  ;;  %904 = vmatprep.mubr.bf16.mxu1 %v1300_v1 }
 0x977   :  { %882 = vmatprep.subr.bf16.mxu1 %v1378_v6 }
 0x97a   :  { %883 = vmatpush1.bf16.msra.mxu1 %v1386_v8  ;;  %v192_v8 = vadd.f32 %v1525_v48, %v1458_v32  ;;  %v1195_v32 = vld [vmem:[%s1647_s6 + $0x10] sm:$0xff]  }
 0x97b   :  { %884 = vmatprep.subr.bf16.mxu1 %v1395_v10 }
 0x97e   :  { %885 = vmatpush1.bf16.msra.mxu1 %v1403_v12 }
 0x97f   :  { %886 = vmatprep.subr.bf16.mxu1 %v1413_v14 }
 0x981   :  { %v771_v44 = vpop.permute.xlu1 %770 }
 0x982   :  { %887 = vmatpush1.bf16.msra.mxu1 %v1421_v16  ;;  %vm772_vm12 = vcmp.eq.s32.totalorder %v771_v44, 1 }
 0xa35   :  { %v736_v2 = vpop.f32.mrf.mxu1 }
 0xa36   :  { %v743_v43 = vadd.f32 %v736_v2, %v190_v53  ;;  %v200_v2 = vadd.f32 %v1531_v51, %v1455_v22  ;;  %v1302_v22 = vmov 0.0   ;;  %v1194_v51 = vld [vmem:[%s1647_s6 + $0x18] sm:$0xff]  }
 0xa37   :  { %v738_v4 = vpop.f32.mrf.mxu1  ;;  %1145 = vmatprep.subr.bf16.mxu0 %v1302_v22 }
 0xa38   :  { %v1125_v54 = vmul.f32 -1.442695, %v743_v43  ;;  %v744_v10 = vadd.f32 %v738_v4, %v192_v8 }
 0xa39   :  { %v740_v55 = vpop.f32.mrf.mxu1 }
 0xa3a   :  { %1258 = vpow2.f32 %v1125_v54  ;;  %v1126_v47 = vmul.f32 -1.442695, %v744_v10 }
 0xa3b   :  { %v741_v6 = vpop.f32.mrf.mxu1  ;;  %1260 = vtanh.f32 %v744_v10 }
 0xa47   :  { %v1259_v56 = vpop.eup %1258 }
 0xa48   :  { %v748_v12 = vadd.f32 1.0, %v1259_v56  ;;  %v1261_v14 = vpop.eup %1260 }
 0xa4a   :  { %1262 = vrcp.f32 %v748_v12 }
 0xa4b   :  { %1264 = vpow2.f32 %v1126_v47  ;;  %v1197_v47 = vld [vmem:[%s1647_s6] sm:$0xff]  }
 0xa57   :  { %v1263_v16 = vpop.eup %1262 }
 0xa58   :  { %v759_v57 = vmul.f32 %v1263_v16, %v1261_v14  ;;  %v1265_v58 = vpop.eup %1264  ;;  %v758_v60 = vmul.f32 %v1263_v16, %v689_v46 }
 0xa59   :  { %v755_v59 = vadd.f32 1.0, %v1265_v58 }
 0xa5a   :  { %761 = vrot.lane.b32.xlu0 %v759_v57, %s1301_s18 }
 0xa5b   :  { %1266 = vrcp.f32 %v755_v59 }
 0xa68   :  { %v1267_v63 = vpop.eup %1266 }
 0xacc   :  { %v762_v61 = vpop.permute.xlu0 %761 }
 0xacd   :  { %v764_v62 = vadd.f32 %v762_v61, %v758_v60 }
 0xacf   :  { %1268 = vtanh.f32 %v764_v62  ;;  %v774_v48 = vsel %vm772_vm12, %v764_v62, %v689_v46 }
 0xadc   :  { %v1269_v0 = vpop.eup %1268 }
 0xadd   :  { %v766_v3 = vmul.f32 %v1269_v0, %v1267_v63 }
 0xadf   :  { %v773_v5 = vsel %vm772_vm12, %v766_v3, %v688_v39 }
 0xae0   :  { %v780_v7 = vpack.c.bf16 %v773_v5, %v773_v5 }
 0xae2   :  { %782 = vrot.lane.b32.xlu0 %v780_v7, %s1301_s18 }
 0xae6   :  { %855 = vperm.xlu0 %1162, %v853_v9   ;;  %v1133_v9 = vld [vmem:[%s1648_s7] ss:$0 sm:$0xff] }
 0xb54   :  { %v783_v11 = vpop.permute.xlu0 %782 }
 0xb55   :  { %1127 = vmatmul.mubr.msk.bf16.vlgmr.msra.gmra.mxu0 %vm118_vm0, %v783_v11 }
 0xb56   :  { %1153 = vmatprep.mubr.msk.bf16.mxu0 %vm1303_vm1, %v1302_v22  ;;  %1146 = vmatpush3.bf16.msra.mxu0 %v1194_v51 }
 0xb57   :  { %1147 = vmatprep.subr.bf16.mxu0 %v1302_v22 }
 0xb5a   :  { %1148 = vmatpush3.bf16.msra.mxu0 %v1195_v32 }
 0xb5b   :  { %1149 = vmatprep.subr.bf16.mxu0 %v1302_v22 }
 0xb5e   :  { %1150 = vmatpush3.bf16.msra.mxu0 %v1196_v52 }
 0xb5f   :  { %1151 = vmatprep.subr.bf16.mxu0 %v1302_v22 }
 0xb61   :  { %v856_v33 = vpop.permute.xlu0 %855 }
 0xb62   :  { %vm857_vm14 = vcmp.eq.s32.totalorder %v856_v33, 1  ;;  %1152 = vmatpush3.bf16.msra.mxu0 %v1197_v47 }
 0xc15   :  { %v821_v15 = vpop.f32.mrf.mxu0 }
 0xc16   :  { %v828_v17 = vadd.f32 %v821_v15, %v196_v13 }
 0xc17   :  { %v823_v19 = vpop.f32.mrf.mxu0 }
 0xc18   :  { %v1128_v20 = vmul.f32 -1.442695, %v828_v17  ;;  %v829_v25 = vadd.f32 %v823_v19, %v198_v24 }
 0xc19   :  { %v825_v21 = vpop.f32.mrf.mxu0 }
 0xc1a   :  { %1270 = vpow2.f32 %v1128_v20  ;;  %v1129_v49 = vmul.f32 -1.442695, %v829_v25 }
 0xc1b   :  { %v826_v23 = vpop.f32.mrf.mxu0  ;;  %1272 = vtanh.f32 %v829_v25 }
 0xc27   :  { %v1271_v26 = vpop.eup %1270 }
 0xc28   :  { %v833_v27 = vadd.f32 1.0, %v1271_v26  ;;  %v1273_v45 = vpop.eup %1272 }
 0xc2a   :  { %1274 = vrcp.f32 %v833_v27  ;;  %v1045_v27 = vld [vmem:[%s1649_s2] sm:$0xff] }
 0xc2b   :  { %1276 = vpow2.f32 %v1129_v49 }
 0xc37   :  { %v1275_v28 = vpop.eup %1274 }
 0xc38   :  { %v844_v29 = vmul.f32 %v1275_v28, %v1273_v45  ;;  %v1277_v30 = vpop.eup %1276  ;;  %v843_v34 = vmul.f32 %v1275_v28, %v774_v48  ;;  %v1304_v45 = vmov 6  }
 0xc39   :  { %v840_v31 = vadd.f32 1.0, %v1277_v30 }
 0xc3a   :  { %846 = vrot.lane.b32.xlu1 %v844_v29, %s1301_s18  ;;  %v1047_v29 = vand.u32 127, %v48_v18 }
 0xc3b   :  { %1278 = vrcp.f32 %v840_v31 }
 0xc3c   :  { %vm1065_vm4 = vcmp.eq.s32.totalorder %v1047_v29, 2  ;;  %vm1064_vm5 = vcmp.eq.s32.totalorder %v1047_v29, 1  ;;  %vm1063_vm6 = vcmp.eq.s32.totalorder %v1047_v29, 0 }
 0xc48   :  { %v1279_v36 = vpop.eup %1278 }
 0xcac   :  { %v847_v46 = vpop.permute.xlu1 %846 }
 0xcad   :  { %v849_v35 = vadd.f32 %v847_v46, %v843_v34 }
 0xcaf   :  { %1280 = vtanh.f32 %v849_v35  ;;  %v859_v50 = vsel %vm857_vm14, %v849_v35, %v774_v48 }
 0xcbc   :  { %v1281_v37 = vpop.eup %1280 }
 0xcbd   :  { %v851_v39 = vmul.f32 %v1281_v37, %v1279_v36 }
 0xcbf   :  { %v858_v40 = vsel %vm857_vm14, %v851_v39, %v773_v5 }
 0xcc0   :  { %v865_v41 = vpack.c.bf16 %v858_v40, %v858_v40 }
 0xcc2   :  { %867 = vrot.lane.b32.xlu1 %v865_v41, %s1301_s18 }
 0xcc6   :  { %940 = vperm.xlu1 %1163, %v938_v42  }
 0xcca   :  { %1164 = vset.pattern.permute.xlu1 %v1304_v45 }
 0xd34   :  { %v868_v53 = vpop.permute.xlu1 %867 }
 0xd35   :  { %1130 = vmatmul.mubr.msk.bf16.vlgmr.msra.gmra.mxu1 %vm118_vm0, %v868_v53 }
 0xd41   :  { %v941_v48 = vpop.permute.xlu1 %940 }
 0xd42   :  { %vm942_vm2 = vcmp.eq.s32.totalorder %v941_v48, 1 }
 0xdf5   :  { %v906_v43 = vpop.f32.mrf.mxu1 }
 0xdf6   :  { %v913_v4 = vadd.f32 %v906_v43, %v200_v2 }
 0xdf7   :  { %v908_v54 = vpop.f32.mrf.mxu1 }
 0xdf8   :  { %v1131_v55 = vmul.f32 -1.442695, %v913_v4  ;;  %v914_v10 = vadd.f32 %v908_v54, %v202_v38 }
 0xdf9   :  { %v910_v6 = vpop.f32.mrf.mxu1 }
 0xdfa   :  { %1282 = vpow2.f32 %v1131_v55  ;;  %v1132_v58 = vmul.f32 -1.442695, %v914_v10 }
 0xdfb   :  { %v911_v8 = vpop.f32.mrf.mxu1  ;;  %1284 = vtanh.f32 %v914_v10 }
 0xe07   :  { %v1283_v56 = vpop.eup %1282 }
 0xe08   :  { %v918_v1 = vadd.f32 1.0, %v1283_v56  ;;  %v1285_v12 = vpop.eup %1284 }
 0xe0a   :  { %1286 = vrcp.f32 %v918_v1 }
 0xe0b   :  { %1288 = vpow2.f32 %v1132_v58 }
 0xe17   :  { %v1287_v14 = vpop.eup %1286 }
 0xe18   :  { %v929_v16 = vmul.f32 %v1287_v14, %v1285_v12  ;;  %v928_v57 = vmul.f32 %v1287_v14, %v859_v50  ;;  %v1289_v59 = vpop.eup %1288 }
 0xe19   :  { %v925_v44 = vadd.f32 1.0, %v1289_v59 }
 0xe1a   :  { %931 = vrot.lane.b32.xlu0 %v929_v16, %s1301_s18 }
 0xe1b   :  { %1290 = vrcp.f32 %v925_v44 }
 0xe28   :  { %v1291_v62 = vpop.eup %1290 }
 0xe8c   :  { %v932_v60 = vpop.permute.xlu0 %931 }
 0xe8d   :  { %v934_v61 = vadd.f32 %v932_v60, %v928_v57 }
 0xe8f   :  { %1292 = vtanh.f32 %v934_v61 }
 0xe9c   :  { %v1293_v63 = vpop.eup %1292 }
 0xe9d   :  { %v936_v0 = vmul.f32 %v1293_v63, %v1291_v62 }
 0xe9f   :  { %v943_v3 = vsel %vm942_vm2, %v936_v0, %v858_v40 }
 0xea0   :  { %v944_v5 = vpack.c.bf16 %v943_v3, %v943_v3 }
 0xea2   :  { %961 = vrot.lane.b32.xlu0 %v944_v5, %s1301_s18 }
 0xf14   :  { %v962_v7 = vpop.permute.xlu0 %961 }
 0xf15   :  { %1154 = vmatmul.mubr.msk.bf16.vlgmr.msra.gmra.mxu0 %vm118_vm0, %v962_v7 }
 0xfd5   :  { %v1024_v11 = vpop.f32.mrf.mxu0 }
 0xfd6   :  { %v1025_v13 = vadd.f32 %v1133_v9, %v1024_v11 }
 0xfd7   :  { %v1155_v15 = vpop.f32.mrf.mxu0 }
 0xfd8   :  { %v1031_v17 = vsel %vm1030_vm3, %v1025_v13, -inf }
 0xfd9   :  { %1032 = vmax.xlane.f32.xlu1 %v1031_v17  ;;  %v1027_v19 = vpop.f32.mrf.mxu0 }
 0xfdb   :  { %v1156_v20 = vpop.f32.mrf.mxu0 }
0x1062   :  { %v1033_v21 = vpop.xlane.xlu1 %1032 }
0x1063   :  { %v1034_v23 = vsub.f32 %v1025_v13, %v1033_v21 }
0x1065   :  { %v1035_v24 = vmul.f32 1.442695, %v1034_v23 }
0x1067   :  { %1294 = vpow2.f32 %v1035_v24 }
0x1074   :  { %v1295_v25 = vpop.eup %1294 }
0x1075   :  { %v1037_v26 = vsel %vm1030_vm3, %v1295_v25, 0.0 }
0x1076   :  { %1038 = vadd.xlane.f32.xlu0 %v1037_v26 }
0x108c   :  { %1049 = vperm.xlu0 %1162, %v1045_v27  }
0x1090   :  { %1165 = vset.pattern.permute.xlu0 %v1304_v45 }
0x10ff   :  { %v1039_v28 = vpop.xlane.xlu0 %1038 }
0x1100   :  { %1296 = vlog2.f32 %v1039_v28 }
0x1101   :  { %1298 = vrcp.f32 %v1039_v28 }
0x1107   :  { %v1050_v30 = vpop.permute.xlu0 %1049 }
0x1108   :  { %vm1051_vm0 = vcmp.eq.s32.totalorder %v1047_v29, %v1050_v30 }
0x1109   :  { %v1139_v50 = vsel %vm1051_vm0, 1.0, %v1302_v22 }
0x110d   :  { %v1297_v49 = vpop.eup %1296 }
0x110e   :  { %v1299_v31 = vpop.eup %1298  ;;  %v1041_v33 = vmul.f32 0.6931472, %v1297_v49 }
0x110f   :  { %v1044_v46 = vmul.f32 %v1299_v31, %v1295_v25 }
0x1110   :  { %v1042_v34 = vsub.f32 %v1034_v23, %v1041_v33 }
0x1112   :  { %v1058_v35 = vmul.f32 %v1044_v46, %v1042_v34  ;;  %v1054_v37 = vmul.f32 %v1139_v50, %v1042_v34 }
0x1114   :  { %v1059_v36 = vsel %vm1030_vm3, %v1058_v35, 0.0  ;;  %v1055_v39 = vsel %vm1030_vm3, %v1054_v37, 0.0 }
0x1115   :  { %1060 = vadd.xlane.f32.xlu1 %v1059_v36 }
0x1119   :  { %1056 = vadd.xlane.f32.xlu1 %v1055_v39 }
0x112a   :  { %1069 = vperm.xlu1 %1164, %v1025_v13  }
0x119e   :  { %v1061_v40 = vpop.xlane.xlu1 %1060 }
0x119f   :  { %v1062_v18 = vsub.f32 0.0, %v1061_v40 }
0x11a1   :  { %v1066_v42 = vsel %vm1065_vm4, %v1062_v18, 0.0 }
0x11a2   :  { %v1057_v41 = vpop.xlane.xlu1 %1056 }
0x11a6   :  { %v1070_v53 = vpop.permute.xlu1 %1069 }
0x11a7   :  { %v1072_v2 = vsel %vm1064_vm5, %v1070_v53, %v1066_v42 }
0x11a8   :  { %v1073_v43 = vsel %vm1063_vm6, %v1057_v41, %v1072_v2 }
0x11a9   :  { %1074 = vst [vmem:[%s1650_s8] sm:$0xff] %v1073_v43 }

</bundles_post_ra>
